<compile_context>
chip_gen: v6e
topology: v6e:2x2x1
jax: 0.10.0
libtpu: 0.0.40
codegen_flags: <defaults>
</compile_context>

<pallas_src>
import functools

import jax
import jax.numpy as jnp
from jax import lax
from jax.experimental import pallas as pl
from jax.experimental.pallas import tpu as pltpu

_LANE = 128
_SUBLANE_F32 = 8
_SUBLANE_BF16 = 16


# ----------------------------- Pallas kernel --------------------------------

def _lstm_fc_kernel(x_ref,      # (1, Tc*Bb, E)  time-major embedded chunk
                    wih0_ref,   # (E, 4H)   layer-0 input -> gates
                    whh0_ref,   # (H, 4H)   layer-0 hidden -> gates
                    b0_ref,     # (1, 4H)   layer-0 bias (b_ih + b_hh), f32
                    wih1_ref,   # (H, 4H)   layer-1 input (=h0) -> gates
                    whh1_ref,   # (H, 4H)   layer-1 hidden -> gates
                    b1_ref,     # (1, 4H)   layer-1 bias (b_ih + b_hh), f32
                    wfc_ref,    # (H, Op)   fc weight (transposed, lane padded)
                    bfc_ref,    # (1, Op)   fc bias (lane padded), f32
                    out_ref,    # (1, Bb, Op) logits, lane-dense
                    xg_ref,     # (Tc*Bb, 4H) f32 scratch: x@W_ih0 + b0
                    h0_ref, c0_ref, h1_ref, c1_ref,   # (Bb, H) f32 carried state
                    *, seq_len, chunk_steps, batch_block, unroll, mask_tail):
    t_chunk = pl.program_id(1)
    n_chunks = pl.num_programs(1)
    B = batch_block
    H = whh0_ref.shape[0]

    # carried recurrent state: zero-init at the first time chunk of each batch
    # block (matches init_hidden()).
    @pl.when(t_chunk == 0)
    def _():
        h0_ref[...] = jnp.zeros_like(h0_ref)
        c0_ref[...] = jnp.zeros_like(c0_ref)
        h1_ref[...] = jnp.zeros_like(h1_ref)
        c1_ref[...] = jnp.zeros_like(c1_ref)

    # weights/biases loaded once per kernel body (constant index_map keeps
    # them resident across all grid iterations).
    whh0 = whh0_ref[...]
    wih1 = wih1_ref[...]
    whh1 = whh1_ref[...]
    b1 = b1_ref[...]
    cdt = whh0.dtype                     # matmul operand dtype (f32 or bf16)

    # (1) hoisted input->gates projection for the WHOLE chunk: one MXU matmul.
    xg_ref[...] = (jnp.dot(x_ref[0], wih0_ref[...],
                           preferred_element_type=jnp.float32) + b0_ref[...])

    def gates_to_hc(gates, c):
        # lane-sliced transcendentals (PyTorch gate order i|f|g|o):
        # sigmoid on i,f and o; tanh on g only  -> ~5H EUP lanes vs 8H.
        sif = jax.nn.sigmoid(gates[:, 0:2 * H])
        i = sif[:, 0:H]
        f = sif[:, H:2 * H]
        g = jnp.tanh(gates[:, 2 * H:3 * H])
        o = jax.nn.sigmoid(gates[:, 3 * H:4 * H])
        c_new = f * c + i * g
        h_new = o * jnp.tanh(c_new)
        return h_new, c_new

    def step(t, carry):
        h0, c0, h1, c1 = carry
        # layer 0: only the recurrent matmul (input part precomputed above).
        row = pl.multiple_of(t * B, B)
        g0 = xg_ref[pl.ds(row, B), :] + jnp.dot(
            h0.astype(cdt), whh0, preferred_element_type=jnp.float32)
        h0n, c0n = gates_to_hc(g0, c0)
        # layer 1: two back-to-back MXU pushes, no per-step concatenate.
        # (inter-layer dropout is identity in eval mode)
        g1 = (jnp.dot(h0n.astype(cdt), wih1, preferred_element_type=jnp.float32)
              + jnp.dot(h1.astype(cdt), whh1, preferred_element_type=jnp.float32)
              + b1)
        h1n, c1n = gates_to_hc(g1, c1)
        if mask_tail:
            # keep state frozen for zero-padded timesteps in the last chunk.
            valid = (t_chunk * chunk_steps + t) < seq_len
            h0n = jnp.where(valid, h0n, h0)
            c0n = jnp.where(valid, c0n, c0)
            h1n = jnp.where(valid, h1n, h1)
            c1n = jnp.where(valid, c1n, c1)
        return h0n, c0n, h1n, c1n

    carry0 = (h0_ref[...], c0_ref[...], h1_ref[...], c1_ref[...])
    # chunk_steps is static; partial unroll keeps cross-step scheduling overlap
    # without the vreg-spill cliff of a full unroll over long sequences.
    h0, c0, h1, c1 = lax.fori_loop(0, chunk_steps, step, carry0, unroll=unroll)
    h0_ref[...] = h0
    c0_ref[...] = c0
    h1_ref[...] = h1
    c1_ref[...] = c1

    # output[:, -1, :] == final top-layer hidden state (unidirectional LSTM);
    # eval-mode dropout is identity; lane-dense (Bb, Op) store on last chunk.
    @pl.when(t_chunk == n_chunks - 1)
    def _():
        out_ref[0] = (jnp.dot(h1.astype(cdt), wfc_ref[...],
                              preferred_element_type=jnp.float32) + bfc_ref[...])


# --------------------------- one-time param prep ------------------------------

def prepare_params(params, compute_dtype=jnp.float32):
    """Model-load-time prep: transposes, bias fusion, lane padding of the fc,
    dtype cast.  Kept OUT of the per-call jit path.  bf16 operands run at full
    MXU rate on v5e/v6e/v7x; accumulation stays f32."""
    H = params["w_hh0"].shape[1]
    O = params["fc_w"].shape[0]
    O_pad = max(_LANE, -(-O // _LANE) * _LANE)

    wfc = jnp.zeros((H, O_pad), jnp.float32).at[:, :O].set(params["fc_w"].T)
    bfc = jnp.zeros((1, O_pad), jnp.float32).at[:, :O].set(params["fc_b"])

    return {
        "embedding": params["embedding"].astype(compute_dtype),
        "wih0": params["w_ih0"].T.astype(compute_dtype),                 # (E, 4H)
        "whh0": params["w_hh0"].T.astype(compute_dtype),                 # (H, 4H)
        "b0": (params["b_ih0"] + params["b_hh0"])[None, :].astype(jnp.float32),
        "wih1": params["w_ih1"].T.astype(compute_dtype),                 # (H, 4H)
        "whh1": params["w_hh1"].T.astype(compute_dtype),                 # (H, 4H)
        "b1": (params["b_ih1"] + params["b_hh1"])[None, :].astype(jnp.float32),
        "wfc": wfc.astype(compute_dtype),                                # (H, Op)
        "bfc": bfc,                                                      # (1, Op)
    }


# ------------------------------- wrapper -------------------------------------

@functools.partial(jax.jit,
                   static_argnames=("out_dim", "time_chunk", "batch_block_max"))
def emotion_lstm_forward(tokens, prep, *, out_dim, time_chunk=64,
                         batch_block_max=64):
    """tokens: (B, T) int32.  Returns logits (B, out_dim) float32.

    time_chunk bounds VMEM to O(Tc) (shrink it for v7x's 64 MiB VMEM);
    batch_block_max splits large batches into independent grid blocks
    (parallel axis -> both TensorCores on v7x)."""
    emb_table = prep["embedding"]
    B, T = tokens.shape
    E = emb_table.shape[1]
    H = prep["whh0"].shape[0]
    O_pad = prep["wfc"].shape[1]

    # batch padding / blocking: 16 sublanes for bf16 operands, else 8.
    sublane = _SUBLANE_BF16 if emb_table.dtype == jnp.bfloat16 else _SUBLANE_F32
    Bp = max(sublane, -(-B // sublane) * sublane)
    if Bp <= batch_block_max:
        Bb, nb = Bp, 1
    else:
        Bb = batch_block_max
        Bp = -(-Bp // Bb) * Bb
        nb = Bp // Bb

    # time chunking.
    Tc = min(T, time_chunk)
    n_chunks = -(-T // Tc)
    T_pad = n_chunks * Tc
    mask_tail = T_pad != T

    # Time-major gather straight from the embedding table: the only reorder is
    # a tiny int32 token permute -> rows ordered [batch_block, t, b_in_block].
    tok = jnp.zeros((Bp, T_pad), jnp.int32).at[:B, :T].set(tokens)
    tok = tok.reshape(nb, Bb, T_pad).transpose(0, 2, 1).reshape(-1)
    x = jnp.take(emb_table, tok, axis=0).reshape(nb, T_pad * Bb, E)

    operands = (x, prep["wih0"], prep["whh0"], prep["b0"],
                prep["wih1"], prep["whh1"], prep["b1"],
                prep["wfc"], prep["bfc"])

    def const_spec(a):
        ndim = a.ndim
        return pl.BlockSpec(a.shape, lambda b, t, _n=ndim: (0,) * _n)

    in_specs = ([pl.BlockSpec((1, Tc * Bb, E), lambda b, t: (b, t, 0))]
                + [const_spec(a) for a in operands[1:]])
    out_spec = pl.BlockSpec((1, Bb, O_pad), lambda b, t: (b, 0, 0))

    # VMEM budget derived from actual operand / scratch sizes.
    x_bytes = 2 * Tc * Bb * E * x.dtype.itemsize                 # double-buffered
    w_bytes = sum(int(a.size) * a.dtype.itemsize for a in operands[1:])
    scratch_bytes = (Tc * Bb * 4 * H + 4 * Bb * H) * 4
    out_bytes = 2 * Bb * O_pad * 4
    need = x_bytes + w_bytes + scratch_bytes + out_bytes
    vmem_limit = int(min(max(2 * need, 32 << 20), 100 << 20))

    flops = (2 * nb * T_pad * Bb * E * 4 * H                     # input proj
             + nb * T_pad * 3 * 2 * Bb * H * 4 * H               # recurrent matmuls
             + nb * 2 * Bb * H * O_pad)                          # fc
    transcendentals = nb * T_pad * Bb * 2 * 5 * H
    bytes_accessed = int(sum(int(o.size) * o.dtype.itemsize for o in operands)
                         + nb * Bb * O_pad * 4)

    kernel = functools.partial(
        _lstm_fc_kernel, seq_len=T, chunk_steps=Tc, batch_block=Bb,
        unroll=min(Tc, 8), mask_tail=mask_tail)

    out = pl.pallas_call(
        kernel,
        grid=(nb, n_chunks),
        out_shape=jax.ShapeDtypeStruct((nb, Bb, O_pad), jnp.float32),
        in_specs=in_specs,
        out_specs=out_spec,
        scratch_shapes=[
            pltpu.VMEM((Tc * Bb, 4 * H), jnp.float32),   # xg
            pltpu.VMEM((Bb, H), jnp.float32),            # h0
            pltpu.VMEM((Bb, H), jnp.float32),            # c0
            pltpu.VMEM((Bb, H), jnp.float32),            # h1
            pltpu.VMEM((Bb, H), jnp.float32),            # c1
        ],
        compiler_params=pltpu.CompilerParams(
            dimension_semantics=("parallel", "arbitrary"),
            vmem_limit_bytes=vmem_limit),
        cost_estimate=pl.CostEstimate(flops=int(flops),
                                      transcendentals=int(transcendentals),
                                      bytes_accessed=bytes_accessed),
    )(*operands)
    return out.reshape(Bp, O_pad)[:B, :out_dim]


# --------------------------- parameter construction --------------------------

def make_params(key, vocab_size, embedding_dim, hidden_units, output_size):
    ks = jax.random.split(key, 12)
    H = hidden_units
    s = 1.0 / jnp.sqrt(jnp.float32(H))
    u = lambda k, shape, scale: jax.random.uniform(k, shape, jnp.float32, -scale, scale)
    return {
        "embedding": jax.random.normal(ks[0], (vocab_size, embedding_dim), jnp.float32),
        # layer 0
        "w_ih0": u(ks[1], (4 * H, embedding_dim), s),
        "w_hh0": u(ks[2], (4 * H, H), s),
        "b_ih0": u(ks[3], (4 * H,), s),
        "b_hh0": u(ks[4], (4 * H,), s),
        # layer 1
        "w_ih1": u(ks[5], (4 * H, H), s),
        "w_hh1": u(ks[6], (4 * H, H), s),
        "b_ih1": u(ks[7], (4 * H,), s),
        "b_hh1": u(ks[8], (4 * H,), s),
        # fc
        "fc_w": u(ks[9], (output_size, H), s),
        "fc_b": u(ks[10], (output_size,), s),
    }


# ------------------------------ pure-JAX reference ---------------------------

def reference_forward(tokens, params):
    emb = jnp.take(params["embedding"], tokens, axis=0)          # (B, T, E)
    H = params["w_hh0"].shape[1]
    B = tokens.shape[0]

    def cell(x_t, h, c, w_ih, w_hh, b_ih, b_hh):
        g = x_t @ w_ih.T + h @ w_hh.T + b_ih + b_hh
        i, f, gg, o = (jax.nn.sigmoid(g[:, :H]), jax.nn.sigmoid(g[:, H:2 * H]),
                       jnp.tanh(g[:, 2 * H:3 * H]), jax.nn.sigmoid(g[:, 3 * H:]))
        c = f * c + i * gg
        h = o * jnp.tanh(c)
        return h, c

    def step(carry, x_t):
        h0, c0, h1, c1 = carry
        h0, c0 = cell(x_t, h0, c0, params["w_ih0"], params["w_hh0"],
                      params["b_ih0"], params["b_hh0"])
        h1, c1 = cell(h0, h1, c1, params["w_ih1"], params["w_hh1"],
                      params["b_ih1"], params["b_hh1"])
        return (h0, c0, h1, c1), None

    z = jnp.zeros((B, H), jnp.float32)
    (h0, c0, h1, c1), _ = lax.scan(step, (z, z, z, z),
                                   jnp.transpose(emb, (1, 0, 2)))
    return h1 @ params["fc_w"].T + params["fc_b"]


# ---------------------------------- main --------------------------------------

if __name__ == "__main__":
    VOCAB = 64
    EMB = 32
    HIDDEN = 32
    OUT = 8
    BATCH = 2
    SEQ = 8

    root = jax.random.PRNGKey(0)
    k_params, k_tokens = jax.random.split(root)
    params = make_params(k_params, VOCAB, EMB, HIDDEN, OUT)
    tokens = jax.random.randint(k_tokens, (BATCH, SEQ), 0, VOCAB, dtype=jnp.int32)

    ref = jax.block_until_ready(reference_forward(tokens, params))

    # f32 path, single time chunk: tight check against the pure-JAX reference.
    prep_f32 = prepare_params(params, jnp.float32)
    logits = jax.block_until_ready(
        emotion_lstm_forward(tokens, prep_f32, out_dim=OUT))
    assert logits.shape == (BATCH, OUT), logits.shape
    assert jnp.allclose(logits, ref, rtol=1e-4, atol=1e-4), (
        f"max abs diff {jnp.max(jnp.abs(logits - ref))}")

    # multi-chunk grid with carried h/c state + padded-tail masking
    # (time_chunk=3 -> chunks of 3/3/2-with-1-masked-step).
    logits_chunked = jax.block_until_ready(
        emotion_lstm_forward(tokens, prep_f32, out_dim=OUT, time_chunk=3))
    assert jnp.allclose(logits_chunked, ref, rtol=1e-4, atol=1e-4), (
        f"chunked max abs diff {jnp.max(jnp.abs(logits_chunked - ref))}")

    # bf16 matmul-operand path (full-rate on v5e/v6e/v7x MXUs): loose tolerance.
    prep_bf16 = prepare_params(params, jnp.bfloat16)
    logits_bf16 = jax.block_until_ready(
        emotion_lstm_forward(tokens, prep_bf16, out_dim=OUT))
    assert logits_bf16.shape == (BATCH, OUT), logits_bf16.shape
    assert jnp.allclose(logits_bf16, ref, rtol=1e-1, atol=1e-1), (
        f"bf16 max abs diff {jnp.max(jnp.abs(logits_bf16 - ref))}")

    print("KERNEL_OK")
</pallas_src>

<mosaic_0001>
module attributes {stable_mosaic.version = 11 : i64} {
  func.func @_lstm_fc_kernel(%arg0: i32, %arg1: i32, %arg2: memref<1x64x32xf32, #tpu.memory_space<vmem>>, %arg3: memref<32x128xf32, #tpu.memory_space<vmem>>, %arg4: memref<32x128xf32, #tpu.memory_space<vmem>>, %arg5: memref<1x128xf32, #tpu.memory_space<vmem>>, %arg6: memref<32x128xf32, #tpu.memory_space<vmem>>, %arg7: memref<32x128xf32, #tpu.memory_space<vmem>>, %arg8: memref<1x128xf32, #tpu.memory_space<vmem>>, %arg9: memref<32x128xf32, #tpu.memory_space<vmem>>, %arg10: memref<1x128xf32, #tpu.memory_space<vmem>>, %arg11: memref<1x8x128xf32, #tpu.memory_space<vmem>>, %arg12: memref<64x128xf32, #tpu.memory_space<vmem>>, %arg13: memref<8x32xf32, #tpu.memory_space<vmem>>, %arg14: memref<8x32xf32, #tpu.memory_space<vmem>>, %arg15: memref<8x32xf32, #tpu.memory_space<vmem>>, %arg16: memref<8x32xf32, #tpu.memory_space<vmem>>) attributes {dimension_semantics = [#tpu.dimension_semantics<parallel>, #tpu.dimension_semantics<arbitrary>], iteration_bounds = array<i64: 1, 1>, scalar_prefetch = 0 : i64, scratch_operands = 5 : i64, tpu.core_type = #tpu.core_type<tc>, window_params = [{transform_indices = @transform_0, window_bounds = array<i64: 1, 64, 32>}, {pipeline_mode = #tpu.pipeline_mode<synchronous>, transform_indices = @transform_1, window_bounds = array<i64: 32, 128>}, {pipeline_mode = #tpu.pipeline_mode<synchronous>, transform_indices = @transform_2, window_bounds = array<i64: 32, 128>}, {pipeline_mode = #tpu.pipeline_mode<synchronous>, transform_indices = @transform_3, window_bounds = array<i64: 1, 128>}, {pipeline_mode = #tpu.pipeline_mode<synchronous>, transform_indices = @transform_4, window_bounds = array<i64: 32, 128>}, {pipeline_mode = #tpu.pipeline_mode<synchronous>, transform_indices = @transform_5, window_bounds = array<i64: 32, 128>}, {pipeline_mode = #tpu.pipeline_mode<synchronous>, transform_indices = @transform_6, window_bounds = array<i64: 1, 128>}, {pipeline_mode = #tpu.pipeline_mode<synchronous>, transform_indices = @transform_7, window_bounds = array<i64: 32, 128>}, {pipeline_mode = #tpu.pipeline_mode<synchronous>, transform_indices = @transform_8, window_bounds = array<i64: 1, 128>}, {transform_indices = @transform_9, window_bounds = array<i64: 1, 8, 128>}]} {
    %c0_i32 = arith.constant 0 : i32
    %0 = arith.cmpi eq, %arg1, %c0_i32 : i32
    %1 = arith.extui %0 : i1 to i32
    %c0_i32_0 = arith.constant 0 : i32
    %2 = arith.cmpi ne, %1, %c0_i32_0 : i32
    scf.if %2 {
      %cst_108 = arith.constant 0.000000e+00 : f32
      %450 = vector.broadcast %cst_108 : f32 to vector<8x32xf32>
      %c0_109 = arith.constant 0 : index
      %c0_110 = arith.constant 0 : index
      %451 = vector.load %arg13[%c0_109, %c0_110] : memref<8x32xf32, #tpu.memory_space<vmem>>, vector<8x32xf32>
      tpu.vector_store %arg13[%c0_109, %c0_110], %450 {strides = array<i32>} : memref<8x32xf32, #tpu.memory_space<vmem>>, vector<8x32xf32>,
      %cst_111 = arith.constant 0.000000e+00 : f32
      %452 = vector.broadcast %cst_111 : f32 to vector<8x32xf32>
      %c0_112 = arith.constant 0 : index
      %c0_113 = arith.constant 0 : index
      %453 = vector.load %arg14[%c0_112, %c0_113] : memref<8x32xf32, #tpu.memory_space<vmem>>, vector<8x32xf32>
      tpu.vector_store %arg14[%c0_112, %c0_113], %452 {strides = array<i32>} : memref<8x32xf32, #tpu.memory_space<vmem>>, vector<8x32xf32>,
      %cst_114 = arith.constant 0.000000e+00 : f32
      %454 = vector.broadcast %cst_114 : f32 to vector<8x32xf32>
      %c0_115 = arith.constant 0 : index
      %c0_116 = arith.constant 0 : index
      %455 = vector.load %arg15[%c0_115, %c0_116] : memref<8x32xf32, #tpu.memory_space<vmem>>, vector<8x32xf32>
      tpu.vector_store %arg15[%c0_115, %c0_116], %454 {strides = array<i32>} : memref<8x32xf32, #tpu.memory_space<vmem>>, vector<8x32xf32>,
      %cst_117 = arith.constant 0.000000e+00 : f32
      %456 = vector.broadcast %cst_117 : f32 to vector<8x32xf32>
      %c0_118 = arith.constant 0 : index
      %c0_119 = arith.constant 0 : index
      %457 = vector.load %arg16[%c0_118, %c0_119] : memref<8x32xf32, #tpu.memory_space<vmem>>, vector<8x32xf32>
      tpu.vector_store %arg16[%c0_118, %c0_119], %456 {strides = array<i32>} : memref<8x32xf32, #tpu.memory_space<vmem>>, vector<8x32xf32>,
    } else {
    }
    %c0 = arith.constant 0 : index
    %c0_1 = arith.constant 0 : index
    %3 = vector.load %arg4[%c0, %c0_1] : memref<32x128xf32, #tpu.memory_space<vmem>>, vector<32x128xf32>
    %c0_2 = arith.constant 0 : index
    %c0_3 = arith.constant 0 : index
    %4 = vector.load %arg6[%c0_2, %c0_3] : memref<32x128xf32, #tpu.memory_space<vmem>>, vector<32x128xf32>
    %c0_4 = arith.constant 0 : index
    %c0_5 = arith.constant 0 : index
    %5 = vector.load %arg7[%c0_4, %c0_5] : memref<32x128xf32, #tpu.memory_space<vmem>>, vector<32x128xf32>
    %c0_6 = arith.constant 0 : index
    %c0_7 = arith.constant 0 : index
    %6 = vector.load %arg8[%c0_6, %c0_7] : memref<1x128xf32, #tpu.memory_space<vmem>>, vector<1x128xf32>
    %c0_8 = arith.constant 0 : index
    %c0_9 = arith.constant 0 : index
    %c0_10 = arith.constant 0 : index
    %7 = vector.load %arg2[%c0_8, %c0_9, %c0_10] : memref<1x64x32xf32, #tpu.memory_space<vmem>>, vector<1x64x32xf32>
    %8 = vector.shape_cast %7 : vector<1x64x32xf32> to vector<64x32xf32>
    %c0_11 = arith.constant 0 : index
    %c0_12 = arith.constant 0 : index
    %9 = vector.load %arg3[%c0_11, %c0_12] : memref<32x128xf32, #tpu.memory_space<vmem>>, vector<32x128xf32>
    %cst = arith.constant dense<0.000000e+00> : vector<64x128xf32>
    %10 = tpu.matmul %8, %9, %cst {dimension_numbers = #tpu.dot_dimension_numbers<[1], [0], [0], [1], [0, 0, 1, 1], [], []>} : vector<64x32xf32>, vector<32x128xf32>, vector<64x128xf32> -> vector<64x128xf32>
    %c0_13 = arith.constant 0 : index
    %c0_14 = arith.constant 0 : index
    %11 = vector.load %arg5[%c0_13, %c0_14] : memref<1x128xf32, #tpu.memory_space<vmem>>, vector<1x128xf32>
    %12 = vector.broadcast %11 : vector<1x128xf32> to vector<64x128xf32>
    %13 = arith.addf %10, %12 : vector<64x128xf32>
    %c0_15 = arith.constant 0 : index
    %c0_16 = arith.constant 0 : index
    %14 = vector.load %arg12[%c0_15, %c0_16] : memref<64x128xf32, #tpu.memory_space<vmem>>, vector<64x128xf32>
    tpu.vector_store %arg12[%c0_15, %c0_16], %13 {strides = array<i32>} : memref<64x128xf32, #tpu.memory_space<vmem>>, vector<64x128xf32>,
    %c0_17 = arith.constant 0 : index
    %c0_18 = arith.constant 0 : index
    %15 = vector.load %arg13[%c0_17, %c0_18] : memref<8x32xf32, #tpu.memory_space<vmem>>, vector<8x32xf32>
    %c0_19 = arith.constant 0 : index
    %c0_20 = arith.constant 0 : index
    %16 = vector.load %arg14[%c0_19, %c0_20] : memref<8x32xf32, #tpu.memory_space<vmem>>, vector<8x32xf32>
    %c0_21 = arith.constant 0 : index
    %c0_22 = arith.constant 0 : index
    %17 = vector.load %arg15[%c0_21, %c0_22] : memref<8x32xf32, #tpu.memory_space<vmem>>, vector<8x32xf32>
    %c0_23 = arith.constant 0 : index
    %c0_24 = arith.constant 0 : index
    %18 = vector.load %arg16[%c0_23, %c0_24] : memref<8x32xf32, #tpu.memory_space<vmem>>, vector<8x32xf32>
    %c0_i32_25 = arith.constant 0 : i32
    %c8_i32 = arith.constant 8 : i32
    %19 = arith.muli %c0_i32_25, %c8_i32 : i32
    %20 = tpu.assume_multiple %19, 8 : i32
    %21 = arith.index_cast %20 : i32 to index
    %c0_26 = arith.constant 0 : index
    %22 = vector.load %arg12[%21, %c0_26] : memref<64x128xf32, #tpu.memory_space<vmem>>, vector<8x128xf32>
    %cst_27 = arith.constant dense<0.000000e+00> : vector<8x128xf32>
    %23 = tpu.matmul %15, %3, %cst_27 {dimension_numbers = #tpu.dot_dimension_numbers<[1], [0], [0], [1], [0, 0, 1, 1], [], []>} : vector<8x32xf32>, vector<32x128xf32>, vector<8x128xf32> -> vector<8x128xf32>
    %24 = arith.addf %22, %23 : vector<8x128xf32>
    %25 = vector.extract_strided_slice %24 {offsets = [0, 0], sizes = [8, 64], strides = [1, 1]} : vector<8x128xf32> to vector<8x64xf32>
    %26 = arith.negf %25 : vector<8x64xf32>
    %27 = math.exp %26 : vector<8x64xf32>
    %cst_28 = arith.constant 1.000000e+00 : f32
    %28 = vector.broadcast %cst_28 : f32 to vector<8x64xf32>
    %29 = arith.addf %28, %27 : vector<8x64xf32>
    %30 = arith.divf %28, %29 : vector<8x64xf32>
    %31 = vector.extract_strided_slice %30 {offsets = [0, 0], sizes = [8, 32], strides = [1, 1]} : vector<8x64xf32> to vector<8x32xf32>
    %32 = vector.extract_strided_slice %30 {offsets = [0, 32], sizes = [8, 32], strides = [1, 1]} : vector<8x64xf32> to vector<8x32xf32>
    %33 = vector.extract_strided_slice %24 {offsets = [0, 64], sizes = [8, 32], strides = [1, 1]} : vector<8x128xf32> to vector<8x32xf32>
    %34 = math.tanh %33 : vector<8x32xf32>
    %35 = vector.extract_strided_slice %24 {offsets = [0, 96], sizes = [8, 32], strides = [1, 1]} : vector<8x128xf32> to vector<8x32xf32>
    %36 = arith.negf %35 : vector<8x32xf32>
    %37 = math.exp %36 : vector<8x32xf32>
    %cst_29 = arith.constant 1.000000e+00 : f32
    %38 = vector.broadcast %cst_29 : f32 to vector<8x32xf32>
    %39 = arith.addf %38, %37 : vector<8x32xf32>
    %40 = arith.divf %38, %39 : vector<8x32xf32>
    %41 = arith.mulf %32, %16 : vector<8x32xf32>
    %42 = arith.mulf %31, %34 : vector<8x32xf32>
    %43 = arith.addf %41, %42 : vector<8x32xf32>
    %44 = math.tanh %43 : vector<8x32xf32>
    %45 = arith.mulf %40, %44 : vector<8x32xf32>
    %cst_30 = arith.constant dense<0.000000e+00> : vector<8x128xf32>
    %46 = tpu.matmul %45, %4, %cst_30 {dimension_numbers = #tpu.dot_dimension_numbers<[1], [0], [0], [1], [0, 0, 1, 1], [], []>} : vector<8x32xf32>, vector<32x128xf32>, vector<8x128xf32> -> vector<8x128xf32>
    %cst_31 = arith.constant dense<0.000000e+00> : vector<8x128xf32>
    %47 = tpu.matmul %17, %5, %cst_31 {dimension_numbers = #tpu.dot_dimension_numbers<[1], [0], [0], [1], [0, 0, 1, 1], [], []>} : vector<8x32xf32>, vector<32x128xf32>, vector<8x128xf32> -> vector<8x128xf32>
    %48 = arith.addf %46, %47 : vector<8x128xf32>
    %49 = vector.broadcast %6 : vector<1x128xf32> to vector<8x128xf32>
    %50 = arith.addf %48, %49 : vector<8x128xf32>
    %51 = vector.extract_strided_slice %50 {offsets = [0, 0], sizes = [8, 64], strides = [1, 1]} : vector<8x128xf32> to vector<8x64xf32>
    %52 = arith.negf %51 : vector<8x64xf32>
    %53 = math.exp %52 : vector<8x64xf32>
    %cst_32 = arith.constant 1.000000e+00 : f32
    %54 = vector.broadcast %cst_32 : f32 to vector<8x64xf32>
    %55 = arith.addf %54, %53 : vector<8x64xf32>
    %56 = arith.divf %54, %55 : vector<8x64xf32>
    %57 = vector.extract_strided_slice %56 {offsets = [0, 0], sizes = [8, 32], strides = [1, 1]} : vector<8x64xf32> to vector<8x32xf32>
    %58 = vector.extract_strided_slice %56 {offsets = [0, 32], sizes = [8, 32], strides = [1, 1]} : vector<8x64xf32> to vector<8x32xf32>
    %59 = vector.extract_strided_slice %50 {offsets = [0, 64], sizes = [8, 32], strides = [1, 1]} : vector<8x128xf32> to vector<8x32xf32>
    %60 = math.tanh %59 : vector<8x32xf32>
    %61 = vector.extract_strided_slice %50 {offsets = [0, 96], sizes = [8, 32], strides = [1, 1]} : vector<8x128xf32> to vector<8x32xf32>
    %62 = arith.negf %61 : vector<8x32xf32>
    %63 = math.exp %62 : vector<8x32xf32>
    %cst_33 = arith.constant 1.000000e+00 : f32
    %64 = vector.broadcast %cst_33 : f32 to vector<8x32xf32>
    %65 = arith.addf %64, %63 : vector<8x32xf32>
    %66 = arith.divf %64, %65 : vector<8x32xf32>
    %67 = arith.mulf %58, %18 : vector<8x32xf32>
    %68 = arith.mulf %57, %60 : vector<8x32xf32>
    %69 = arith.addf %67, %68 : vector<8x32xf32>
    %70 = math.tanh %69 : vector<8x32xf32>
    %71 = arith.mulf %66, %70 : vector<8x32xf32>
    %c1_i32 = arith.constant 1 : i32
    %c8_i32_34 = arith.constant 8 : i32
    %72 = arith.muli %c1_i32, %c8_i32_34 : i32
    %73 = tpu.assume_multiple %72, 8 : i32
    %74 = arith.index_cast %73 : i32 to index
    %c0_35 = arith.constant 0 : index
    %75 = vector.load %arg12[%74, %c0_35] : memref<64x128xf32, #tpu.memory_space<vmem>>, vector<8x128xf32>
    %cst_36 = arith.constant dense<0.000000e+00> : vector<8x128xf32>
    %76 = tpu.matmul %45, %3, %cst_36 {dimension_numbers = #tpu.dot_dimension_numbers<[1], [0], [0], [1], [0, 0, 1, 1], [], []>} : vector<8x32xf32>, vector<32x128xf32>, vector<8x128xf32> -> vector<8x128xf32>
    %77 = arith.addf %75, %76 : vector<8x128xf32>
    %78 = vector.extract_strided_slice %77 {offsets = [0, 0], sizes = [8, 64], strides = [1, 1]} : vector<8x128xf32> to vector<8x64xf32>
    %79 = arith.negf %78 : vector<8x64xf32>
    %80 = math.exp %79 : vector<8x64xf32>
    %cst_37 = arith.constant 1.000000e+00 : f32
    %81 = vector.broadcast %cst_37 : f32 to vector<8x64xf32>
    %82 = arith.addf %81, %80 : vector<8x64xf32>
    %83 = arith.divf %81, %82 : vector<8x64xf32>
    %84 = vector.extract_strided_slice %83 {offsets = [0, 0], sizes = [8, 32], strides = [1, 1]} : vector<8x64xf32> to vector<8x32xf32>
    %85 = vector.extract_strided_slice %83 {offsets = [0, 32], sizes = [8, 32], strides = [1, 1]} : vector<8x64xf32> to vector<8x32xf32>
    %86 = vector.extract_strided_slice %77 {offsets = [0, 64], sizes = [8, 32], strides = [1, 1]} : vector<8x128xf32> to vector<8x32xf32>
    %87 = math.tanh %86 : vector<8x32xf32>
    %88 = vector.extract_strided_slice %77 {offsets = [0, 96], sizes = [8, 32], strides = [1, 1]} : vector<8x128xf32> to vector<8x32xf32>
    %89 = arith.negf %88 : vector<8x32xf32>
    %90 = math.exp %89 : vector<8x32xf32>
    %cst_38 = arith.constant 1.000000e+00 : f32
    %91 = vector.broadcast %cst_38 : f32 to vector<8x32xf32>
    %92 = arith.addf %91, %90 : vector<8x32xf32>
    %93 = arith.divf %91, %92 : vector<8x32xf32>
    %94 = arith.mulf %85, %43 : vector<8x32xf32>
    %95 = arith.mulf %84, %87 : vector<8x32xf32>
    %96 = arith.addf %94, %95 : vector<8x32xf32>
    %97 = math.tanh %96 : vector<8x32xf32>
    %98 = arith.mulf %93, %97 : vector<8x32xf32>
    %cst_39 = arith.constant dense<0.000000e+00> : vector<8x128xf32>
    %99 = tpu.matmul %98, %4, %cst_39 {dimension_numbers = #tpu.dot_dimension_numbers<[1], [0], [0], [1], [0, 0, 1, 1], [], []>} : vector<8x32xf32>, vector<32x128xf32>, vector<8x128xf32> -> vector<8x128xf32>
    %cst_40 = arith.constant dense<0.000000e+00> : vector<8x128xf32>
    %100 = tpu.matmul %71, %5, %cst_40 {dimension_numbers = #tpu.dot_dimension_numbers<[1], [0], [0], [1], [0, 0, 1, 1], [], []>} : vector<8x32xf32>, vector<32x128xf32>, vector<8x128xf32> -> vector<8x128xf32>
    %101 = arith.addf %99, %100 : vector<8x128xf32>
    %102 = vector.broadcast %6 : vector<1x128xf32> to vector<8x128xf32>
    %103 = arith.addf %101, %102 : vector<8x128xf32>
    %104 = vector.extract_strided_slice %103 {offsets = [0, 0], sizes = [8, 64], strides = [1, 1]} : vector<8x128xf32> to vector<8x64xf32>
    %105 = arith.negf %104 : vector<8x64xf32>
    %106 = math.exp %105 : vector<8x64xf32>
    %cst_41 = arith.constant 1.000000e+00 : f32
    %107 = vector.broadcast %cst_41 : f32 to vector<8x64xf32>
    %108 = arith.addf %107, %106 : vector<8x64xf32>
    %109 = arith.divf %107, %108 : vector<8x64xf32>
    %110 = vector.extract_strided_slice %109 {offsets = [0, 0], sizes = [8, 32], strides = [1, 1]} : vector<8x64xf32> to vector<8x32xf32>
    %111 = vector.extract_strided_slice %109 {offsets = [0, 32], sizes = [8, 32], strides = [1, 1]} : vector<8x64xf32> to vector<8x32xf32>
    %112 = vector.extract_strided_slice %103 {offsets = [0, 64], sizes = [8, 32], strides = [1, 1]} : vector<8x128xf32> to vector<8x32xf32>
    %113 = math.tanh %112 : vector<8x32xf32>
    %114 = vector.extract_strided_slice %103 {offsets = [0, 96], sizes = [8, 32], strides = [1, 1]} : vector<8x128xf32> to vector<8x32xf32>
    %115 = arith.negf %114 : vector<8x32xf32>
    %116 = math.exp %115 : vector<8x32xf32>
    %cst_42 = arith.constant 1.000000e+00 : f32
    %117 = vector.broadcast %cst_42 : f32 to vector<8x32xf32>
    %118 = arith.addf %117, %116 : vector<8x32xf32>
    %119 = arith.divf %117, %118 : vector<8x32xf32>
    %120 = arith.mulf %111, %69 : vector<8x32xf32>
    %121 = arith.mulf %110, %113 : vector<8x32xf32>
    %122 = arith.addf %120, %121 : vector<8x32xf32>
    %123 = math.tanh %122 : vector<8x32xf32>
    %124 = arith.mulf %119, %123 : vector<8x32xf32>
    %c2_i32 = arith.constant 2 : i32
    %c8_i32_43 = arith.constant 8 : i32
    %125 = arith.muli %c2_i32, %c8_i32_43 : i32
    %126 = tpu.assume_multiple %125, 8 : i32
    %127 = arith.index_cast %126 : i32 to index
    %c0_44 = arith.constant 0 : index
    %128 = vector.load %arg12[%127, %c0_44] : memref<64x128xf32, #tpu.memory_space<vmem>>, vector<8x128xf32>
    %cst_45 = arith.constant dense<0.000000e+00> : vector<8x128xf32>
    %129 = tpu.matmul %98, %3, %cst_45 {dimension_numbers = #tpu.dot_dimension_numbers<[1], [0], [0], [1], [0, 0, 1, 1], [], []>} : vector<8x32xf32>, vector<32x128xf32>, vector<8x128xf32> -> vector<8x128xf32>
    %130 = arith.addf %128, %129 : vector<8x128xf32>
    %131 = vector.extract_strided_slice %130 {offsets = [0, 0], sizes = [8, 64], strides = [1, 1]} : vector<8x128xf32> to vector<8x64xf32>
    %132 = arith.negf %131 : vector<8x64xf32>
    %133 = math.exp %132 : vector<8x64xf32>
    %cst_46 = arith.constant 1.000000e+00 : f32
    %134 = vector.broadcast %cst_46 : f32 to vector<8x64xf32>
    %135 = arith.addf %134, %133 : vector<8x64xf32>
    %136 = arith.divf %134, %135 : vector<8x64xf32>
    %137 = vector.extract_strided_slice %136 {offsets = [0, 0], sizes = [8, 32], strides = [1, 1]} : vector<8x64xf32> to vector<8x32xf32>
    %138 = vector.extract_strided_slice %136 {offsets = [0, 32], sizes = [8, 32], strides = [1, 1]} : vector<8x64xf32> to vector<8x32xf32>
    %139 = vector.extract_strided_slice %130 {offsets = [0, 64], sizes = [8, 32], strides = [1, 1]} : vector<8x128xf32> to vector<8x32xf32>
    %140 = math.tanh %139 : vector<8x32xf32>
    %141 = vector.extract_strided_slice %130 {offsets = [0, 96], sizes = [8, 32], strides = [1, 1]} : vector<8x128xf32> to vector<8x32xf32>
    %142 = arith.negf %141 : vector<8x32xf32>
    %143 = math.exp %142 : vector<8x32xf32>
    %cst_47 = arith.constant 1.000000e+00 : f32
    %144 = vector.broadcast %cst_47 : f32 to vector<8x32xf32>
    %145 = arith.addf %144, %143 : vector<8x32xf32>
    %146 = arith.divf %144, %145 : vector<8x32xf32>
    %147 = arith.mulf %138, %96 : vector<8x32xf32>
    %148 = arith.mulf %137, %140 : vector<8x32xf32>
    %149 = arith.addf %147, %148 : vector<8x32xf32>
    %150 = math.tanh %149 : vector<8x32xf32>
    %151 = arith.mulf %146, %150 : vector<8x32xf32>
    %cst_48 = arith.constant dense<0.000000e+00> : vector<8x128xf32>
    %152 = tpu.matmul %151, %4, %cst_48 {dimension_numbers = #tpu.dot_dimension_numbers<[1], [0], [0], [1], [0, 0, 1, 1], [], []>} : vector<8x32xf32>, vector<32x128xf32>, vector<8x128xf32> -> vector<8x128xf32>
    %cst_49 = arith.constant dense<0.000000e+00> : vector<8x128xf32>
    %153 = tpu.matmul %124, %5, %cst_49 {dimension_numbers = #tpu.dot_dimension_numbers<[1], [0], [0], [1], [0, 0, 1, 1], [], []>} : vector<8x32xf32>, vector<32x128xf32>, vector<8x128xf32> -> vector<8x128xf32>
    %154 = arith.addf %152, %153 : vector<8x128xf32>
    %155 = vector.broadcast %6 : vector<1x128xf32> to vector<8x128xf32>
    %156 = arith.addf %154, %155 : vector<8x128xf32>
    %157 = vector.extract_strided_slice %156 {offsets = [0, 0], sizes = [8, 64], strides = [1, 1]} : vector<8x128xf32> to vector<8x64xf32>
    %158 = arith.negf %157 : vector<8x64xf32>
    %159 = math.exp %158 : vector<8x64xf32>
    %cst_50 = arith.constant 1.000000e+00 : f32
    %160 = vector.broadcast %cst_50 : f32 to vector<8x64xf32>
    %161 = arith.addf %160, %159 : vector<8x64xf32>
    %162 = arith.divf %160, %161 : vector<8x64xf32>
    %163 = vector.extract_strided_slice %162 {offsets = [0, 0], sizes = [8, 32], strides = [1, 1]} : vector<8x64xf32> to vector<8x32xf32>
    %164 = vector.extract_strided_slice %162 {offsets = [0, 32], sizes = [8, 32], strides = [1, 1]} : vector<8x64xf32> to vector<8x32xf32>
    %165 = vector.extract_strided_slice %156 {offsets = [0, 64], sizes = [8, 32], strides = [1, 1]} : vector<8x128xf32> to vector<8x32xf32>
    %166 = math.tanh %165 : vector<8x32xf32>
    %167 = vector.extract_strided_slice %156 {offsets = [0, 96], sizes = [8, 32], strides = [1, 1]} : vector<8x128xf32> to vector<8x32xf32>
    %168 = arith.negf %167 : vector<8x32xf32>
    %169 = math.exp %168 : vector<8x32xf32>
    %cst_51 = arith.constant 1.000000e+00 : f32
    %170 = vector.broadcast %cst_51 : f32 to vector<8x32xf32>
    %171 = arith.addf %170, %169 : vector<8x32xf32>
    %172 = arith.divf %170, %171 : vector<8x32xf32>
    %173 = arith.mulf %164, %122 : vector<8x32xf32>
    %174 = arith.mulf %163, %166 : vector<8x32xf32>
    %175 = arith.addf %173, %174 : vector<8x32xf32>
    %176 = math.tanh %175 : vector<8x32xf32>
    %177 = arith.mulf %172, %176 : vector<8x32xf32>
    %c3_i32 = arith.constant 3 : i32
    %c8_i32_52 = arith.constant 8 : i32
    %178 = arith.muli %c3_i32, %c8_i32_52 : i32
    %179 = tpu.assume_multiple %178, 8 : i32
    %180 = arith.index_cast %179 : i32 to index
    %c0_53 = arith.constant 0 : index
    %181 = vector.load %arg12[%180, %c0_53] : memref<64x128xf32, #tpu.memory_space<vmem>>, vector<8x128xf32>
    %cst_54 = arith.constant dense<0.000000e+00> : vector<8x128xf32>
    %182 = tpu.matmul %151, %3, %cst_54 {dimension_numbers = #tpu.dot_dimension_numbers<[1], [0], [0], [1], [0, 0, 1, 1], [], []>} : vector<8x32xf32>, vector<32x128xf32>, vector<8x128xf32> -> vector<8x128xf32>
    %183 = arith.addf %181, %182 : vector<8x128xf32>
    %184 = vector.extract_strided_slice %183 {offsets = [0, 0], sizes = [8, 64], strides = [1, 1]} : vector<8x128xf32> to vector<8x64xf32>
    %185 = arith.negf %184 : vector<8x64xf32>
    %186 = math.exp %185 : vector<8x64xf32>
    %cst_55 = arith.constant 1.000000e+00 : f32
    %187 = vector.broadcast %cst_55 : f32 to vector<8x64xf32>
    %188 = arith.addf %187, %186 : vector<8x64xf32>
    %189 = arith.divf %187, %188 : vector<8x64xf32>
    %190 = vector.extract_strided_slice %189 {offsets = [0, 0], sizes = [8, 32], strides = [1, 1]} : vector<8x64xf32> to vector<8x32xf32>
    %191 = vector.extract_strided_slice %189 {offsets = [0, 32], sizes = [8, 32], strides = [1, 1]} : vector<8x64xf32> to vector<8x32xf32>
    %192 = vector.extract_strided_slice %183 {offsets = [0, 64], sizes = [8, 32], strides = [1, 1]} : vector<8x128xf32> to vector<8x32xf32>
    %193 = math.tanh %192 : vector<8x32xf32>
    %194 = vector.extract_strided_slice %183 {offsets = [0, 96], sizes = [8, 32], strides = [1, 1]} : vector<8x128xf32> to vector<8x32xf32>
    %195 = arith.negf %194 : vector<8x32xf32>
    %196 = math.exp %195 : vector<8x32xf32>
    %cst_56 = arith.constant 1.000000e+00 : f32
    %197 = vector.broadcast %cst_56 : f32 to vector<8x32xf32>
    %198 = arith.addf %197, %196 : vector<8x32xf32>
    %199 = arith.divf %197, %198 : vector<8x32xf32>
    %200 = arith.mulf %191, %149 : vector<8x32xf32>
    %201 = arith.mulf %190, %193 : vector<8x32xf32>
    %202 = arith.addf %200, %201 : vector<8x32xf32>
    %203 = math.tanh %202 : vector<8x32xf32>
    %204 = arith.mulf %199, %203 : vector<8x32xf32>
    %cst_57 = arith.constant dense<0.000000e+00> : vector<8x128xf32>
    %205 = tpu.matmul %204, %4, %cst_57 {dimension_numbers = #tpu.dot_dimension_numbers<[1], [0], [0], [1], [0, 0, 1, 1], [], []>} : vector<8x32xf32>, vector<32x128xf32>, vector<8x128xf32> -> vector<8x128xf32>
    %cst_58 = arith.constant dense<0.000000e+00> : vector<8x128xf32>
    %206 = tpu.matmul %177, %5, %cst_58 {dimension_numbers = #tpu.dot_dimension_numbers<[1], [0], [0], [1], [0, 0, 1, 1], [], []>} : vector<8x32xf32>, vector<32x128xf32>, vector<8x128xf32> -> vector<8x128xf32>
    %207 = arith.addf %205, %206 : vector<8x128xf32>
    %208 = vector.broadcast %6 : vector<1x128xf32> to vector<8x128xf32>
    %209 = arith.addf %207, %208 : vector<8x128xf32>
    %210 = vector.extract_strided_slice %209 {offsets = [0, 0], sizes = [8, 64], strides = [1, 1]} : vector<8x128xf32> to vector<8x64xf32>
    %211 = arith.negf %210 : vector<8x64xf32>
    %212 = math.exp %211 : vector<8x64xf32>
    %cst_59 = arith.constant 1.000000e+00 : f32
    %213 = vector.broadcast %cst_59 : f32 to vector<8x64xf32>
    %214 = arith.addf %213, %212 : vector<8x64xf32>
    %215 = arith.divf %213, %214 : vector<8x64xf32>
    %216 = vector.extract_strided_slice %215 {offsets = [0, 0], sizes = [8, 32], strides = [1, 1]} : vector<8x64xf32> to vector<8x32xf32>
    %217 = vector.extract_strided_slice %215 {offsets = [0, 32], sizes = [8, 32], strides = [1, 1]} : vector<8x64xf32> to vector<8x32xf32>
    %218 = vector.extract_strided_slice %209 {offsets = [0, 64], sizes = [8, 32], strides = [1, 1]} : vector<8x128xf32> to vector<8x32xf32>
    %219 = math.tanh %218 : vector<8x32xf32>
    %220 = vector.extract_strided_slice %209 {offsets = [0, 96], sizes = [8, 32], strides = [1, 1]} : vector<8x128xf32> to vector<8x32xf32>
    %221 = arith.negf %220 : vector<8x32xf32>
    %222 = math.exp %221 : vector<8x32xf32>
    %cst_60 = arith.constant 1.000000e+00 : f32
    %223 = vector.broadcast %cst_60 : f32 to vector<8x32xf32>
    %224 = arith.addf %223, %222 : vector<8x32xf32>
    %225 = arith.divf %223, %224 : vector<8x32xf32>
    %226 = arith.mulf %217, %175 : vector<8x32xf32>
    %227 = arith.mulf %216, %219 : vector<8x32xf32>
    %228 = arith.addf %226, %227 : vector<8x32xf32>
    %229 = math.tanh %228 : vector<8x32xf32>
    %230 = arith.mulf %225, %229 : vector<8x32xf32>
    %c4_i32 = arith.constant 4 : i32
    %c8_i32_61 = arith.constant 8 : i32
    %231 = arith.muli %c4_i32, %c8_i32_61 : i32
    %232 = tpu.assume_multiple %231, 8 : i32
    %233 = arith.index_cast %232 : i32 to index
    %c0_62 = arith.constant 0 : index
    %234 = vector.load %arg12[%233, %c0_62] : memref<64x128xf32, #tpu.memory_space<vmem>>, vector<8x128xf32>
    %cst_63 = arith.constant dense<0.000000e+00> : vector<8x128xf32>
    %235 = tpu.matmul %204, %3, %cst_63 {dimension_numbers = #tpu.dot_dimension_numbers<[1], [0], [0], [1], [0, 0, 1, 1], [], []>} : vector<8x32xf32>, vector<32x128xf32>, vector<8x128xf32> -> vector<8x128xf32>
    %236 = arith.addf %234, %235 : vector<8x128xf32>
    %237 = vector.extract_strided_slice %236 {offsets = [0, 0], sizes = [8, 64], strides = [1, 1]} : vector<8x128xf32> to vector<8x64xf32>
    %238 = arith.negf %237 : vector<8x64xf32>
    %239 = math.exp %238 : vector<8x64xf32>
    %cst_64 = arith.constant 1.000000e+00 : f32
    %240 = vector.broadcast %cst_64 : f32 to vector<8x64xf32>
    %241 = arith.addf %240, %239 : vector<8x64xf32>
    %242 = arith.divf %240, %241 : vector<8x64xf32>
    %243 = vector.extract_strided_slice %242 {offsets = [0, 0], sizes = [8, 32], strides = [1, 1]} : vector<8x64xf32> to vector<8x32xf32>
    %244 = vector.extract_strided_slice %242 {offsets = [0, 32], sizes = [8, 32], strides = [1, 1]} : vector<8x64xf32> to vector<8x32xf32>
    %245 = vector.extract_strided_slice %236 {offsets = [0, 64], sizes = [8, 32], strides = [1, 1]} : vector<8x128xf32> to vector<8x32xf32>
    %246 = math.tanh %245 : vector<8x32xf32>
    %247 = vector.extract_strided_slice %236 {offsets = [0, 96], sizes = [8, 32], strides = [1, 1]} : vector<8x128xf32> to vector<8x32xf32>
    %248 = arith.negf %247 : vector<8x32xf32>
    %249 = math.exp %248 : vector<8x32xf32>
    %cst_65 = arith.constant 1.000000e+00 : f32
    %250 = vector.broadcast %cst_65 : f32 to vector<8x32xf32>
    %251 = arith.addf %250, %249 : vector<8x32xf32>
    %252 = arith.divf %250, %251 : vector<8x32xf32>
    %253 = arith.mulf %244, %202 : vector<8x32xf32>
    %254 = arith.mulf %243, %246 : vector<8x32xf32>
    %255 = arith.addf %253, %254 : vector<8x32xf32>
    %256 = math.tanh %255 : vector<8x32xf32>
    %257 = arith.mulf %252, %256 : vector<8x32xf32>
    %cst_66 = arith.constant dense<0.000000e+00> : vector<8x128xf32>
    %258 = tpu.matmul %257, %4, %cst_66 {dimension_numbers = #tpu.dot_dimension_numbers<[1], [0], [0], [1], [0, 0, 1, 1], [], []>} : vector<8x32xf32>, vector<32x128xf32>, vector<8x128xf32> -> vector<8x128xf32>
    %cst_67 = arith.constant dense<0.000000e+00> : vector<8x128xf32>
    %259 = tpu.matmul %230, %5, %cst_67 {dimension_numbers = #tpu.dot_dimension_numbers<[1], [0], [0], [1], [0, 0, 1, 1], [], []>} : vector<8x32xf32>, vector<32x128xf32>, vector<8x128xf32> -> vector<8x128xf32>
    %260 = arith.addf %258, %259 : vector<8x128xf32>
    %261 = vector.broadcast %6 : vector<1x128xf32> to vector<8x128xf32>
    %262 = arith.addf %260, %261 : vector<8x128xf32>
    %263 = vector.extract_strided_slice %262 {offsets = [0, 0], sizes = [8, 64], strides = [1, 1]} : vector<8x128xf32> to vector<8x64xf32>
    %264 = arith.negf %263 : vector<8x64xf32>
    %265 = math.exp %264 : vector<8x64xf32>
    %cst_68 = arith.constant 1.000000e+00 : f32
    %266 = vector.broadcast %cst_68 : f32 to vector<8x64xf32>
    %267 = arith.addf %266, %265 : vector<8x64xf32>
    %268 = arith.divf %266, %267 : vector<8x64xf32>
    %269 = vector.extract_strided_slice %268 {offsets = [0, 0], sizes = [8, 32], strides = [1, 1]} : vector<8x64xf32> to vector<8x32xf32>
    %270 = vector.extract_strided_slice %268 {offsets = [0, 32], sizes = [8, 32], strides = [1, 1]} : vector<8x64xf32> to vector<8x32xf32>
    %271 = vector.extract_strided_slice %262 {offsets = [0, 64], sizes = [8, 32], strides = [1, 1]} : vector<8x128xf32> to vector<8x32xf32>
    %272 = math.tanh %271 : vector<8x32xf32>
    %273 = vector.extract_strided_slice %262 {offsets = [0, 96], sizes = [8, 32], strides = [1, 1]} : vector<8x128xf32> to vector<8x32xf32>
    %274 = arith.negf %273 : vector<8x32xf32>
    %275 = math.exp %274 : vector<8x32xf32>
    %cst_69 = arith.constant 1.000000e+00 : f32
    %276 = vector.broadcast %cst_69 : f32 to vector<8x32xf32>
    %277 = arith.addf %276, %275 : vector<8x32xf32>
    %278 = arith.divf %276, %277 : vector<8x32xf32>
    %279 = arith.mulf %270, %228 : vector<8x32xf32>
    %280 = arith.mulf %269, %272 : vector<8x32xf32>
    %281 = arith.addf %279, %280 : vector<8x32xf32>
    %282 = math.tanh %281 : vector<8x32xf32>
    %283 = arith.mulf %278, %282 : vector<8x32xf32>
    %c5_i32 = arith.constant 5 : i32
    %c8_i32_70 = arith.constant 8 : i32
    %284 = arith.muli %c5_i32, %c8_i32_70 : i32
    %285 = tpu.assume_multiple %284, 8 : i32
    %286 = arith.index_cast %285 : i32 to index
    %c0_71 = arith.constant 0 : index
    %287 = vector.load %arg12[%286, %c0_71] : memref<64x128xf32, #tpu.memory_space<vmem>>, vector<8x128xf32>
    %cst_72 = arith.constant dense<0.000000e+00> : vector<8x128xf32>
    %288 = tpu.matmul %257, %3, %cst_72 {dimension_numbers = #tpu.dot_dimension_numbers<[1], [0], [0], [1], [0, 0, 1, 1], [], []>} : vector<8x32xf32>, vector<32x128xf32>, vector<8x128xf32> -> vector<8x128xf32>
    %289 = arith.addf %287, %288 : vector<8x128xf32>
    %290 = vector.extract_strided_slice %289 {offsets = [0, 0], sizes = [8, 64], strides = [1, 1]} : vector<8x128xf32> to vector<8x64xf32>
    %291 = arith.negf %290 : vector<8x64xf32>
    %292 = math.exp %291 : vector<8x64xf32>
    %cst_73 = arith.constant 1.000000e+00 : f32
    %293 = vector.broadcast %cst_73 : f32 to vector<8x64xf32>
    %294 = arith.addf %293, %292 : vector<8x64xf32>
    %295 = arith.divf %293, %294 : vector<8x64xf32>
    %296 = vector.extract_strided_slice %295 {offsets = [0, 0], sizes = [8, 32], strides = [1, 1]} : vector<8x64xf32> to vector<8x32xf32>
    %297 = vector.extract_strided_slice %295 {offsets = [0, 32], sizes = [8, 32], strides = [1, 1]} : vector<8x64xf32> to vector<8x32xf32>
    %298 = vector.extract_strided_slice %289 {offsets = [0, 64], sizes = [8, 32], strides = [1, 1]} : vector<8x128xf32> to vector<8x32xf32>
    %299 = math.tanh %298 : vector<8x32xf32>
    %300 = vector.extract_strided_slice %289 {offsets = [0, 96], sizes = [8, 32], strides = [1, 1]} : vector<8x128xf32> to vector<8x32xf32>
    %301 = arith.negf %300 : vector<8x32xf32>
    %302 = math.exp %301 : vector<8x32xf32>
    %cst_74 = arith.constant 1.000000e+00 : f32
    %303 = vector.broadcast %cst_74 : f32 to vector<8x32xf32>
    %304 = arith.addf %303, %302 : vector<8x32xf32>
    %305 = arith.divf %303, %304 : vector<8x32xf32>
    %306 = arith.mulf %297, %255 : vector<8x32xf32>
    %307 = arith.mulf %296, %299 : vector<8x32xf32>
    %308 = arith.addf %306, %307 : vector<8x32xf32>
    %309 = math.tanh %308 : vector<8x32xf32>
    %310 = arith.mulf %305, %309 : vector<8x32xf32>
    %cst_75 = arith.constant dense<0.000000e+00> : vector<8x128xf32>
    %311 = tpu.matmul %310, %4, %cst_75 {dimension_numbers = #tpu.dot_dimension_numbers<[1], [0], [0], [1], [0, 0, 1, 1], [], []>} : vector<8x32xf32>, vector<32x128xf32>, vector<8x128xf32> -> vector<8x128xf32>
    %cst_76 = arith.constant dense<0.000000e+00> : vector<8x128xf32>
    %312 = tpu.matmul %283, %5, %cst_76 {dimension_numbers = #tpu.dot_dimension_numbers<[1], [0], [0], [1], [0, 0, 1, 1], [], []>} : vector<8x32xf32>, vector<32x128xf32>, vector<8x128xf32> -> vector<8x128xf32>
    %313 = arith.addf %311, %312 : vector<8x128xf32>
    %314 = vector.broadcast %6 : vector<1x128xf32> to vector<8x128xf32>
    %315 = arith.addf %313, %314 : vector<8x128xf32>
    %316 = vector.extract_strided_slice %315 {offsets = [0, 0], sizes = [8, 64], strides = [1, 1]} : vector<8x128xf32> to vector<8x64xf32>
    %317 = arith.negf %316 : vector<8x64xf32>
    %318 = math.exp %317 : vector<8x64xf32>
    %cst_77 = arith.constant 1.000000e+00 : f32
    %319 = vector.broadcast %cst_77 : f32 to vector<8x64xf32>
    %320 = arith.addf %319, %318 : vector<8x64xf32>
    %321 = arith.divf %319, %320 : vector<8x64xf32>
    %322 = vector.extract_strided_slice %321 {offsets = [0, 0], sizes = [8, 32], strides = [1, 1]} : vector<8x64xf32> to vector<8x32xf32>
    %323 = vector.extract_strided_slice %321 {offsets = [0, 32], sizes = [8, 32], strides = [1, 1]} : vector<8x64xf32> to vector<8x32xf32>
    %324 = vector.extract_strided_slice %315 {offsets = [0, 64], sizes = [8, 32], strides = [1, 1]} : vector<8x128xf32> to vector<8x32xf32>
    %325 = math.tanh %324 : vector<8x32xf32>
    %326 = vector.extract_strided_slice %315 {offsets = [0, 96], sizes = [8, 32], strides = [1, 1]} : vector<8x128xf32> to vector<8x32xf32>
    %327 = arith.negf %326 : vector<8x32xf32>
    %328 = math.exp %327 : vector<8x32xf32>
    %cst_78 = arith.constant 1.000000e+00 : f32
    %329 = vector.broadcast %cst_78 : f32 to vector<8x32xf32>
    %330 = arith.addf %329, %328 : vector<8x32xf32>
    %331 = arith.divf %329, %330 : vector<8x32xf32>
    %332 = arith.mulf %323, %281 : vector<8x32xf32>
    %333 = arith.mulf %322, %325 : vector<8x32xf32>
    %334 = arith.addf %332, %333 : vector<8x32xf32>
    %335 = math.tanh %334 : vector<8x32xf32>
    %336 = arith.mulf %331, %335 : vector<8x32xf32>
    %c6_i32 = arith.constant 6 : i32
    %c8_i32_79 = arith.constant 8 : i32
    %337 = arith.muli %c6_i32, %c8_i32_79 : i32
    %338 = tpu.assume_multiple %337, 8 : i32
    %339 = arith.index_cast %338 : i32 to index
    %c0_80 = arith.constant 0 : index
    %340 = vector.load %arg12[%339, %c0_80] : memref<64x128xf32, #tpu.memory_space<vmem>>, vector<8x128xf32>
    %cst_81 = arith.constant dense<0.000000e+00> : vector<8x128xf32>
    %341 = tpu.matmul %310, %3, %cst_81 {dimension_numbers = #tpu.dot_dimension_numbers<[1], [0], [0], [1], [0, 0, 1, 1], [], []>} : vector<8x32xf32>, vector<32x128xf32>, vector<8x128xf32> -> vector<8x128xf32>
    %342 = arith.addf %340, %341 : vector<8x128xf32>
    %343 = vector.extract_strided_slice %342 {offsets = [0, 0], sizes = [8, 64], strides = [1, 1]} : vector<8x128xf32> to vector<8x64xf32>
    %344 = arith.negf %343 : vector<8x64xf32>
    %345 = math.exp %344 : vector<8x64xf32>
    %cst_82 = arith.constant 1.000000e+00 : f32
    %346 = vector.broadcast %cst_82 : f32 to vector<8x64xf32>
    %347 = arith.addf %346, %345 : vector<8x64xf32>
    %348 = arith.divf %346, %347 : vector<8x64xf32>
    %349 = vector.extract_strided_slice %348 {offsets = [0, 0], sizes = [8, 32], strides = [1, 1]} : vector<8x64xf32> to vector<8x32xf32>
    %350 = vector.extract_strided_slice %348 {offsets = [0, 32], sizes = [8, 32], strides = [1, 1]} : vector<8x64xf32> to vector<8x32xf32>
    %351 = vector.extract_strided_slice %342 {offsets = [0, 64], sizes = [8, 32], strides = [1, 1]} : vector<8x128xf32> to vector<8x32xf32>
    %352 = math.tanh %351 : vector<8x32xf32>
    %353 = vector.extract_strided_slice %342 {offsets = [0, 96], sizes = [8, 32], strides = [1, 1]} : vector<8x128xf32> to vector<8x32xf32>
    %354 = arith.negf %353 : vector<8x32xf32>
    %355 = math.exp %354 : vector<8x32xf32>
    %cst_83 = arith.constant 1.000000e+00 : f32
    %356 = vector.broadcast %cst_83 : f32 to vector<8x32xf32>
    %357 = arith.addf %356, %355 : vector<8x32xf32>
    %358 = arith.divf %356, %357 : vector<8x32xf32>
    %359 = arith.mulf %350, %308 : vector<8x32xf32>
    %360 = arith.mulf %349, %352 : vector<8x32xf32>
    %361 = arith.addf %359, %360 : vector<8x32xf32>
    %362 = math.tanh %361 : vector<8x32xf32>
    %363 = arith.mulf %358, %362 : vector<8x32xf32>
    %cst_84 = arith.constant dense<0.000000e+00> : vector<8x128xf32>
    %364 = tpu.matmul %363, %4, %cst_84 {dimension_numbers = #tpu.dot_dimension_numbers<[1], [0], [0], [1], [0, 0, 1, 1], [], []>} : vector<8x32xf32>, vector<32x128xf32>, vector<8x128xf32> -> vector<8x128xf32>
    %cst_85 = arith.constant dense<0.000000e+00> : vector<8x128xf32>
    %365 = tpu.matmul %336, %5, %cst_85 {dimension_numbers = #tpu.dot_dimension_numbers<[1], [0], [0], [1], [0, 0, 1, 1], [], []>} : vector<8x32xf32>, vector<32x128xf32>, vector<8x128xf32> -> vector<8x128xf32>
    %366 = arith.addf %364, %365 : vector<8x128xf32>
    %367 = vector.broadcast %6 : vector<1x128xf32> to vector<8x128xf32>
    %368 = arith.addf %366, %367 : vector<8x128xf32>
    %369 = vector.extract_strided_slice %368 {offsets = [0, 0], sizes = [8, 64], strides = [1, 1]} : vector<8x128xf32> to vector<8x64xf32>
    %370 = arith.negf %369 : vector<8x64xf32>
    %371 = math.exp %370 : vector<8x64xf32>
    %cst_86 = arith.constant 1.000000e+00 : f32
    %372 = vector.broadcast %cst_86 : f32 to vector<8x64xf32>
    %373 = arith.addf %372, %371 : vector<8x64xf32>
    %374 = arith.divf %372, %373 : vector<8x64xf32>
    %375 = vector.extract_strided_slice %374 {offsets = [0, 0], sizes = [8, 32], strides = [1, 1]} : vector<8x64xf32> to vector<8x32xf32>
    %376 = vector.extract_strided_slice %374 {offsets = [0, 32], sizes = [8, 32], strides = [1, 1]} : vector<8x64xf32> to vector<8x32xf32>
    %377 = vector.extract_strided_slice %368 {offsets = [0, 64], sizes = [8, 32], strides = [1, 1]} : vector<8x128xf32> to vector<8x32xf32>
    %378 = math.tanh %377 : vector<8x32xf32>
    %379 = vector.extract_strided_slice %368 {offsets = [0, 96], sizes = [8, 32], strides = [1, 1]} : vector<8x128xf32> to vector<8x32xf32>
    %380 = arith.negf %379 : vector<8x32xf32>
    %381 = math.exp %380 : vector<8x32xf32>
    %cst_87 = arith.constant 1.000000e+00 : f32
    %382 = vector.broadcast %cst_87 : f32 to vector<8x32xf32>
    %383 = arith.addf %382, %381 : vector<8x32xf32>
    %384 = arith.divf %382, %383 : vector<8x32xf32>
    %385 = arith.mulf %376, %334 : vector<8x32xf32>
    %386 = arith.mulf %375, %378 : vector<8x32xf32>
    %387 = arith.addf %385, %386 : vector<8x32xf32>
    %388 = math.tanh %387 : vector<8x32xf32>
    %389 = arith.mulf %384, %388 : vector<8x32xf32>
    %c7_i32 = arith.constant 7 : i32
    %c8_i32_88 = arith.constant 8 : i32
    %390 = arith.muli %c7_i32, %c8_i32_88 : i32
    %391 = tpu.assume_multiple %390, 8 : i32
    %392 = arith.index_cast %391 : i32 to index
    %c0_89 = arith.constant 0 : index
    %393 = vector.load %arg12[%392, %c0_89] : memref<64x128xf32, #tpu.memory_space<vmem>>, vector<8x128xf32>
    %cst_90 = arith.constant dense<0.000000e+00> : vector<8x128xf32>
    %394 = tpu.matmul %363, %3, %cst_90 {dimension_numbers = #tpu.dot_dimension_numbers<[1], [0], [0], [1], [0, 0, 1, 1], [], []>} : vector<8x32xf32>, vector<32x128xf32>, vector<8x128xf32> -> vector<8x128xf32>
    %395 = arith.addf %393, %394 : vector<8x128xf32>
    %396 = vector.extract_strided_slice %395 {offsets = [0, 0], sizes = [8, 64], strides = [1, 1]} : vector<8x128xf32> to vector<8x64xf32>
    %397 = arith.negf %396 : vector<8x64xf32>
    %398 = math.exp %397 : vector<8x64xf32>
    %cst_91 = arith.constant 1.000000e+00 : f32
    %399 = vector.broadcast %cst_91 : f32 to vector<8x64xf32>
    %400 = arith.addf %399, %398 : vector<8x64xf32>
    %401 = arith.divf %399, %400 : vector<8x64xf32>
    %402 = vector.extract_strided_slice %401 {offsets = [0, 0], sizes = [8, 32], strides = [1, 1]} : vector<8x64xf32> to vector<8x32xf32>
    %403 = vector.extract_strided_slice %401 {offsets = [0, 32], sizes = [8, 32], strides = [1, 1]} : vector<8x64xf32> to vector<8x32xf32>
    %404 = vector.extract_strided_slice %395 {offsets = [0, 64], sizes = [8, 32], strides = [1, 1]} : vector<8x128xf32> to vector<8x32xf32>
    %405 = math.tanh %404 : vector<8x32xf32>
    %406 = vector.extract_strided_slice %395 {offsets = [0, 96], sizes = [8, 32], strides = [1, 1]} : vector<8x128xf32> to vector<8x32xf32>
    %407 = arith.negf %406 : vector<8x32xf32>
    %408 = math.exp %407 : vector<8x32xf32>
    %cst_92 = arith.constant 1.000000e+00 : f32
    %409 = vector.broadcast %cst_92 : f32 to vector<8x32xf32>
    %410 = arith.addf %409, %408 : vector<8x32xf32>
    %411 = arith.divf %409, %410 : vector<8x32xf32>
    %412 = arith.mulf %403, %361 : vector<8x32xf32>
    %413 = arith.mulf %402, %405 : vector<8x32xf32>
    %414 = arith.addf %412, %413 : vector<8x32xf32>
    %415 = math.tanh %414 : vector<8x32xf32>
    %416 = arith.mulf %411, %415 : vector<8x32xf32>
    %cst_93 = arith.constant dense<0.000000e+00> : vector<8x128xf32>
    %417 = tpu.matmul %416, %4, %cst_93 {dimension_numbers = #tpu.dot_dimension_numbers<[1], [0], [0], [1], [0, 0, 1, 1], [], []>} : vector<8x32xf32>, vector<32x128xf32>, vector<8x128xf32> -> vector<8x128xf32>
    %cst_94 = arith.constant dense<0.000000e+00> : vector<8x128xf32>
    %418 = tpu.matmul %389, %5, %cst_94 {dimension_numbers = #tpu.dot_dimension_numbers<[1], [0], [0], [1], [0, 0, 1, 1], [], []>} : vector<8x32xf32>, vector<32x128xf32>, vector<8x128xf32> -> vector<8x128xf32>
    %419 = arith.addf %417, %418 : vector<8x128xf32>
    %420 = vector.broadcast %6 : vector<1x128xf32> to vector<8x128xf32>
    %421 = arith.addf %419, %420 : vector<8x128xf32>
    %422 = vector.extract_strided_slice %421 {offsets = [0, 0], sizes = [8, 64], strides = [1, 1]} : vector<8x128xf32> to vector<8x64xf32>
    %423 = arith.negf %422 : vector<8x64xf32>
    %424 = math.exp %423 : vector<8x64xf32>
    %cst_95 = arith.constant 1.000000e+00 : f32
    %425 = vector.broadcast %cst_95 : f32 to vector<8x64xf32>
    %426 = arith.addf %425, %424 : vector<8x64xf32>
    %427 = arith.divf %425, %426 : vector<8x64xf32>
    %428 = vector.extract_strided_slice %427 {offsets = [0, 0], sizes = [8, 32], strides = [1, 1]} : vector<8x64xf32> to vector<8x32xf32>
    %429 = vector.extract_strided_slice %427 {offsets = [0, 32], sizes = [8, 32], strides = [1, 1]} : vector<8x64xf32> to vector<8x32xf32>
    %430 = vector.extract_strided_slice %421 {offsets = [0, 64], sizes = [8, 32], strides = [1, 1]} : vector<8x128xf32> to vector<8x32xf32>
    %431 = math.tanh %430 : vector<8x32xf32>
    %432 = vector.extract_strided_slice %421 {offsets = [0, 96], sizes = [8, 32], strides = [1, 1]} : vector<8x128xf32> to vector<8x32xf32>
    %433 = arith.negf %432 : vector<8x32xf32>
    %434 = math.exp %433 : vector<8x32xf32>
    %cst_96 = arith.constant 1.000000e+00 : f32
    %435 = vector.broadcast %cst_96 : f32 to vector<8x32xf32>
    %436 = arith.addf %435, %434 : vector<8x32xf32>
    %437 = arith.divf %435, %436 : vector<8x32xf32>
    %438 = arith.mulf %429, %387 : vector<8x32xf32>
    %439 = arith.mulf %428, %431 : vector<8x32xf32>
    %440 = arith.addf %438, %439 : vector<8x32xf32>
    %441 = math.tanh %440 : vector<8x32xf32>
    %442 = arith.mulf %437, %441 : vector<8x32xf32>
    %c8_i32_97 = arith.constant 8 : i32
    %c0_98 = arith.constant 0 : index
    %c0_99 = arith.constant 0 : index
    %443 = vector.load %arg13[%c0_98, %c0_99] : memref<8x32xf32, #tpu.memory_space<vmem>>, vector<8x32xf32>
    tpu.vector_store %arg13[%c0_98, %c0_99], %416 {strides = array<i32>} : memref<8x32xf32, #tpu.memory_space<vmem>>, vector<8x32xf32>,
    %c0_100 = arith.constant 0 : index
    %c0_101 = arith.constant 0 : index
    %444 = vector.load %arg14[%c0_100, %c0_101] : memref<8x32xf32, #tpu.memory_space<vmem>>, vector<8x32xf32>
    tpu.vector_store %arg14[%c0_100, %c0_101], %414 {strides = array<i32>} : memref<8x32xf32, #tpu.memory_space<vmem>>, vector<8x32xf32>,
    %c0_102 = arith.constant 0 : index
    %c0_103 = arith.constant 0 : index
    %445 = vector.load %arg15[%c0_102, %c0_103] : memref<8x32xf32, #tpu.memory_space<vmem>>, vector<8x32xf32>
    tpu.vector_store %arg15[%c0_102, %c0_103], %442 {strides = array<i32>} : memref<8x32xf32, #tpu.memory_space<vmem>>, vector<8x32xf32>,
    %c0_104 = arith.constant 0 : index
    %c0_105 = arith.constant 0 : index
    %446 = vector.load %arg16[%c0_104, %c0_105] : memref<8x32xf32, #tpu.memory_space<vmem>>, vector<8x32xf32>
    tpu.vector_store %arg16[%c0_104, %c0_105], %440 {strides = array<i32>} : memref<8x32xf32, #tpu.memory_space<vmem>>, vector<8x32xf32>,
    %c0_i32_106 = arith.constant 0 : i32
    %447 = arith.cmpi eq, %arg1, %c0_i32_106 : i32
    %448 = arith.extui %447 : i1 to i32
    %c0_i32_107 = arith.constant 0 : i32
    %449 = arith.cmpi ne, %448, %c0_i32_107 : i32
    scf.if %449 {
      %c0_108 = arith.constant 0 : index
      %c0_109 = arith.constant 0 : index
      %450 = vector.load %arg9[%c0_108, %c0_109] : memref<32x128xf32, #tpu.memory_space<vmem>>, vector<32x128xf32>
      %cst_110 = arith.constant dense<0.000000e+00> : vector<8x128xf32>
      %451 = tpu.matmul %442, %450, %cst_110 {dimension_numbers = #tpu.dot_dimension_numbers<[1], [0], [0], [1], [0, 0, 1, 1], [], []>} : vector<8x32xf32>, vector<32x128xf32>, vector<8x128xf32> -> vector<8x128xf32>
      %c0_111 = arith.constant 0 : index
      %c0_112 = arith.constant 0 : index
      %452 = vector.load %arg10[%c0_111, %c0_112] : memref<1x128xf32, #tpu.memory_space<vmem>>, vector<1x128xf32>
      %453 = vector.broadcast %452 : vector<1x128xf32> to vector<8x128xf32>
      %454 = arith.addf %451, %453 : vector<8x128xf32>
      %c0_113 = arith.constant 0 : index
      %c0_114 = arith.constant 0 : index
      %c0_115 = arith.constant 0 : index
      %455 = vector.load %arg11[%c0_113, %c0_114, %c0_115] : memref<1x8x128xf32, #tpu.memory_space<vmem>>, vector<1x8x128xf32>
      %456 = vector.shape_cast %455 : vector<1x8x128xf32> to vector<8x128xf32>
      %457 = vector.shape_cast %454 : vector<8x128xf32> to vector<1x8x128xf32>
      tpu.vector_store %arg11[%c0_113, %c0_114, %c0_115], %457 {strides = array<i32>} : memref<1x8x128xf32, #tpu.memory_space<vmem>>, vector<1x8x128xf32>,
    } else {
    }
    return
  }
  func.func @transform_0(%arg0: i32, %arg1: i32) -> (i32, i32, i32) {
    %c0_i32 = arith.constant 0 : i32
    %c0_i32_0 = arith.constant 0 : i32
    return %arg0, %arg1, %c0_i32 : i32, i32, i32
  }
  func.func @transform_1(%arg0: i32, %arg1: i32) -> (i32, i32) {
    %c0_i32 = arith.constant 0 : i32
    %c0_i32_0 = arith.constant 0 : i32
    %c0_i32_1 = arith.constant 0 : i32
    return %c0_i32, %c0_i32_0 : i32, i32
  }
  func.func @transform_2(%arg0: i32, %arg1: i32) -> (i32, i32) {
    %c0_i32 = arith.constant 0 : i32
    %c0_i32_0 = arith.constant 0 : i32
    %c0_i32_1 = arith.constant 0 : i32
    return %c0_i32, %c0_i32_0 : i32, i32
  }
  func.func @transform_3(%arg0: i32, %arg1: i32) -> (i32, i32) {
    %c0_i32 = arith.constant 0 : i32
    %c0_i32_0 = arith.constant 0 : i32
    %c0_i32_1 = arith.constant 0 : i32
    return %c0_i32, %c0_i32_0 : i32, i32
  }
  func.func @transform_4(%arg0: i32, %arg1: i32) -> (i32, i32) {
    %c0_i32 = arith.constant 0 : i32
    %c0_i32_0 = arith.constant 0 : i32
    %c0_i32_1 = arith.constant 0 : i32
    return %c0_i32, %c0_i32_0 : i32, i32
  }
  func.func @transform_5(%arg0: i32, %arg1: i32) -> (i32, i32) {
    %c0_i32 = arith.constant 0 : i32
    %c0_i32_0 = arith.constant 0 : i32
    %c0_i32_1 = arith.constant 0 : i32
    return %c0_i32, %c0_i32_0 : i32, i32
  }
  func.func @transform_6(%arg0: i32, %arg1: i32) -> (i32, i32) {
    %c0_i32 = arith.constant 0 : i32
    %c0_i32_0 = arith.constant 0 : i32
    %c0_i32_1 = arith.constant 0 : i32
    return %c0_i32, %c0_i32_0 : i32, i32
  }
  func.func @transform_7(%arg0: i32, %arg1: i32) -> (i32, i32) {
    %c0_i32 = arith.constant 0 : i32
    %c0_i32_0 = arith.constant 0 : i32
    %c0_i32_1 = arith.constant 0 : i32
    return %c0_i32, %c0_i32_0 : i32, i32
  }
  func.func @transform_8(%arg0: i32, %arg1: i32) -> (i32, i32) {
    %c0_i32 = arith.constant 0 : i32
    %c0_i32_0 = arith.constant 0 : i32
    %c0_i32_1 = arith.constant 0 : i32
    return %c0_i32, %c0_i32_0 : i32, i32
  }
  func.func @transform_9(%arg0: i32, %arg1: i32) -> (i32, i32, i32) {
    %c0_i32 = arith.constant 0 : i32
    %c0_i32_0 = arith.constant 0 : i32
    %c0_i32_1 = arith.constant 0 : i32
    return %arg0, %c0_i32, %c0_i32_0 : i32, i32, i32
  }
}

</mosaic_0001>

<bundles_post_ra>
// kernel: emotion_lstm_forward.1
= control target key start
LH: loop header
LB: loop body
LE: loop exit
PB: predicated region body
PF: predicated region fallthrough
CT: control target
= control target key end

     0   :  { %vm36_vm0 = vcmask 261120   ;;  %v3144_v2 = vmov 0.0   ;;  %vm3145_vm1 = vmmov 0   ;;  %s3146_s30 = smov 64   ;;  %s3147_s10 = smov 32   ;;  %s3812_s1 = inlined_call_operand.vmem [shape: f32[32,128], index: 1, kind: input, shape index: {}]   ;;  %s3813_s2 = inlined_call_operand.vmem [shape: f32[32,128], index: 2, kind: input, shape index: {}]   ;;  %s3814_s0 = inlined_call_operand.vmem [shape: f32[1,64,32], index: 0, kind: input, shape index: {}]   ;;  %s3815_s3 = inlined_call_operand.vmem [shape: f32[1,128], index: 3, kind: input, shape index: {}]   ;;  %s3816_s4 = inlined_call_operand.vmem [shape: f32[32,128], index: 4, kind: input, shape index: {}]   ;;  %s3817_s5 = inlined_call_operand.vmem [shape: f32[32,128], index: 5, kind: input, shape index: {}]   ;;  %s3818_s6 = inlined_call_operand.vmem [shape: f32[1,128], index: 6, kind: input, shape index: {}]   ;;  %s3819_s7 = inlined_call_operand.vmem [shape: f32[32,128], index: 7, kind: input, shape index: {}]   ;;  %s3820_s8 = inlined_call_operand.vmem [shape: f32[1,128], index: 8, kind: input, shape index: {}]   ;;  %s3821_s9 = inlined_call_operand.vmem [shape: f32[1,8,128], index: 9, kind: output, shape index: {}]  }
   0x1   :  { %v65_v0 = vld [vmem:[%s3812_s1 + $0x18] sm:$0xff]  ;;  %v64_v1 = vld [vmem:[%s3812_s1 + $0x10] sm:$0xff]  ;;  %2722 = vmatprep.subr.mxu1 %v3144_v2  ;;  %37 = vst.msk [vmem:[#allocation3] sm:$0xff] %vm36_vm0, %v3144_v2  ;;  %38 = vst.msk [vmem:[#allocation4] sm:$0xff] %vm36_vm0, %v3144_v2  ;;  %2730 = vmatprep.mubr.msk.f32.mxu1 %vm3145_vm1, %v3144_v2 }
   0x2   :  { %v3209_v3 = vld [vmem:[%s3813_s2 + $0x18] sm:$0xff]  ;;  %39 = vst.msk [vmem:[#allocation5] sm:$0xff] %vm36_vm0, %v3144_v2  ;;  %40 = vst.msk [vmem:[#allocation6] sm:$0xff] %vm36_vm0, %v3144_v2  ;;  %2702 = vmatprep.subr.mxu0 %v65_v0  ;;  %v3225_v4 = vld [vmem:[%s3813_s2 + $0x10] sm:$0xff] }
   0x3   :  { %2723 = vmatpush3.msra.mxu1 %v3209_v3  ;;  %2703 = vmatpush3.msra.mxu0 %v65_v0  ;;  %v63_v5 = vld [vmem:[%s3812_s1 + $0x8] sm:$0xff]  ;;  %v54_v6 = vld [vmem:[%s3814_s0] sm:$0xff]  ;;  %v56_v31 = vld [vmem:[%s3814_s0 + $0x10] sm:$0xff] }
   0x4   :  { %2724 = vmatprep.subr.mxu1 %v3144_v2  ;;  %2704 = vmatprep.subr.mxu0 %v64_v1  ;;  %v3238_v7 = vld [vmem:[%s3813_s2 + $0x8] sm:$0xff]  ;;  %v62_v8 = vld [vmem:[%s3812_s1] sm:$0xff]  ;;  %v57_v32 = vld [vmem:[%s3814_s0 + $0x18] sm:$0xff] }
   0x5   :  { %2725 = vmatpush3.msra.mxu1 %v3225_v4  ;;  %2705 = vmatpush3.msra.mxu0 %v64_v1  ;;  %v3248_v9 = vld [vmem:[%s3813_s2] sm:$0xff]  ;;  %v55_v10 = vld [vmem:[%s3814_s0 + $0x8] sm:$0xff]  ;;  %v3285_v33 = vld [vmem:[%s3816_s4 + $0x18] sm:$0xff] }
   0x6   :  { %2726 = vmatprep.subr.mxu1 %v3144_v2  ;;  %2706 = vmatprep.subr.mxu0 %v63_v5  ;;  %v3267_v14 = vld [vmem:[%s3815_s3] ss:$0 sm:$0xff]  ;;  %v3291_v34 = vld [vmem:[%s3817_s5 + $0x18] sm:$0xff]  ;;  %v3296_v35 = vld [vmem:[%s3817_s5 + $0x10] sm:$0xff] }
   0x7   :  { %2710 = vmatprep.mubr.msk.f32.mxu0 %vm36_vm0, %v54_v6  ;;  %2707 = vmatpush3.msra.mxu0 %v63_v5  ;;  %v3303_v36 = vld [vmem:[%s3816_s4 + $0x10] sm:$0xff]  ;;  %v58_v37 = vld [vmem:[%s3814_s0 + $0x20] sm:$0xff]  ;;  %v3313_v38 = vld [vmem:[%s3817_s5 + $0x8] sm:$0xff] }
   0x8   :  { %2727 = vmatpush3.msra.mxu1 %v3238_v7  ;;  %2708 = vmatprep.subr.mxu0 %v62_v8  ;;  %v211_v11 = vld [vmem:[#allocation3] sm:$0xff]  ;;  %v212_v20 = vld [vmem:[#allocation4] sm:$0xff]  ;;  %v60_v42 = vld [vmem:[%s3814_s0 + $0x30] sm:$0xff] }
   0x9   :  { %2728 = vmatprep.subr.mxu1 %v3144_v2  ;;  %2709 = vmatpush3.msra.mxu0 %v62_v8  ;;  %v59_v39 = vld [vmem:[%s3814_s0 + $0x28] sm:$0xff]  ;;  %v3325_v40 = vld [vmem:[%s3817_s5] sm:$0xff]  ;;  %v213_v43 = vld [vmem:[#allocation5] sm:$0xff] }
   0xa   :  { %2729 = vmatpush3.msra.mxu1 %v3248_v9  ;;  %2711 = vmatmul.mubr.msk.f32.vlgmr.msra.gmra.mxu0 %vm36_vm0, %v55_v10  ;;  %v3332_v41 = vld [vmem:[%s3816_s4 + $0x8] sm:$0xff]  ;;  %v61_v44 = vld [vmem:[%s3814_s0 + $0x38] sm:$0xff]  ;;  %v3353_v46 = vld [vmem:[%s3816_s4] sm:$0xff] }
   0xb   :  { %2731 = vmatmul.mubr.msk.f32.vlgmr.msra.gmra.mxu1 %vm36_vm0, %v211_v11  ;;  %2744 = vmatprep.subr.mxu0 %v3144_v2  ;;  %v3410_v59 = vld [vmem:[%s3818_s6] ss:$0 sm:$0xff]  ;;  %v214_v10 = vld [vmem:[#allocation6] sm:$0xff] }
   0xc   :  { %2733 = vmatprep.subr.mxu1 %v3144_v2  ;;  %2741 = vmatprep.mubr.msk.f32.mxu1 %vm3145_vm1, %v3144_v2 }
   0xd   :  { %2713 = vmatprep.mubr.msk.f32.mxu0 %vm36_vm0, %v56_v31  ;;  %2745 = vmatpush3.msra.mxu0 %v3285_v33 }
   0xe   :  { %2734 = vmatpush3.msra.mxu1 %v3291_v34  ;;  %2714 = vmatmul.mubr.msk.f32.gmra.mxu0 %vm36_vm0, %v57_v32 }
   0xf   :  { %2735 = vmatprep.subr.mxu1 %v3144_v2  ;;  %2746 = vmatprep.subr.mxu0 %v3144_v2 }
  0x10   :  { %2736 = vmatpush3.msra.mxu1 %v3296_v35  ;;  %2747 = vmatpush3.msra.mxu0 %v3303_v36 }
  0x11   :  { %2737 = vmatprep.subr.mxu1 %v3144_v2  ;;  %2716 = vmatprep.mubr.msk.f32.mxu0 %vm36_vm0, %v58_v37 }
  0x12   :  { %2738 = vmatpush3.msra.mxu1 %v3313_v38  ;;  %2717 = vmatmul.mubr.msk.f32.gmra.mxu0 %vm36_vm0, %v59_v39 }
  0x13   :  { %2739 = vmatprep.subr.mxu1 %v3144_v2  ;;  %2748 = vmatprep.subr.mxu0 %v3144_v2 }
  0x14   :  { %2740 = vmatpush3.msra.mxu1 %v3325_v40  ;;  %2749 = vmatpush3.msra.mxu0 %v3332_v41 }
  0x15   :  { %2755 = vmatprep.subr.mxu1 %v3144_v2  ;;  %2719 = vmatprep.mubr.msk.f32.mxu0 %vm36_vm0, %v60_v42 }
  0x16   :  { %2742 = vmatmul.mubr.msk.f32.vlgmr.msra.gmra.mxu1 %vm36_vm0, %v213_v43  ;;  %2720 = vmatmul.mubr.msk.f32.gmra.mxu0 %vm36_vm0, %v61_v44 }
  0x17   :  { %2756 = vmatpush3.msra.mxu1 %v3209_v3  ;;  %2750 = vmatprep.subr.mxu0 %v3144_v2 }
  0x18   :  { %2757 = vmatprep.subr.mxu1 %v3144_v2  ;;  %2751 = vmatpush3.msra.mxu0 %v3353_v46 }
  0x19   :  { %2758 = vmatpush3.msra.mxu1 %v3225_v4  ;;  %2752 = vmatprep.mubr.msk.f32.mxu0 %vm3145_vm1, %v3144_v2 }
  0x1a   :  { %2759 = vmatprep.subr.mxu1 %v3144_v2  ;;  %2763 = vmatprep.mubr.msk.f32.mxu1 %vm3145_vm1, %v3144_v2 }
  0x1b   :  { %2760 = vmatpush3.msra.mxu1 %v3238_v7  ;;  %2766 = vmatprep.subr.mxu0 %v3144_v2 }
  0x1c   :  { %2761 = vmatprep.subr.mxu1 %v3144_v2 }
  0x1d   :  { %2762 = vmatpush3.msra.mxu1 %v3248_v9 }
  0x1e   :  { %2777 = vmatprep.subr.mxu1 %v3144_v2 }
  0xca   :  { %v3262_v12 = vpop.f32.mrf.mxu0 }
  0xcb   :  { %v285_v13 = vpop.f32.mrf.mxu1  ;;  %v170_v58 = vadd.f32 %v3262_v12, %v3267_v14 }
  0xcc   :  { %v164_v15 = vpop.f32.mrf.mxu0 }
  0xcd   :  { %v2732_v16 = vpop.f32.mrf.mxu1  ;;  %v165_v17 = vadd.f32 %v3267_v14, %v164_v15 }
  0xce   :  { %v3393_v52 = vpop.f32.mrf.mxu0 }
  0xcf   :  { %v289_v18 = vadd.f32 %v285_v13, %v165_v17 }
  0xd0   :  { %v3395_v53 = vpop.f32.mrf.mxu0 }
  0xd1   :  { %3002 = vtanh.f32 %v289_v18  ;;  %v2523_v21 = vmul.f32 -1.442695, %v289_v18 }
  0xd2   :  { %v3397_v54 = vpop.f32.mrf.mxu0 }
  0xd3   :  { %3004 = vpow2.f32 %v2523_v21 }
  0xd4   :  { %v3399_v55 = vpop.f32.mrf.mxu0 }
  0xd6   :  { %v387_v49 = vpop.f32.mrf.mxu1  ;;  %v3401_v56 = vpop.f32.mrf.mxu0 }
  0xd8   :  { %v2743_v50 = vpop.f32.mrf.mxu1  ;;  %v3403_v57 = vpop.f32.mrf.mxu0 }
  0xde   :  { %v3003_v19 = vpop.eup %3002 }
  0xdf   :  { %303 = vrot.lane.b32.xlu0 %v3003_v19, %s3146_s30 }
  0xe0   :  { %v3005_v22 = vpop.eup %3004 }
  0xe1   :  { %v293_v23 = vadd.f32 1.0, %v3005_v22 }
  0xe3   :  { %298 = vrot.lane.b32.xlu0 %v212_v20, %s3147_s10  ;;  %3006 = vrcp.f32 %v293_v23 }
  0xf0   :  { %v3007_v24 = vpop.eup %3006 }
 0x151   :  { %v304_v25 = vpop.permute.xlu0 %303 }
 0x152   :  { %v306_v26 = vmul.f32 %v3007_v24, %v304_v25 }
 0x154   :  { %308 = vrot.lane.b32.xlu1 %v306_v26, %s3147_s10 }
 0x155   :  { %v299_v27 = vpop.permute.xlu0 %298 }
 0x156   :  { %v301_v28 = vmul.f32 %v3007_v24, %v299_v27 }
 0x1c6   :  { %v309_v29 = vpop.permute.xlu1 %308 }
 0x1c7   :  { %v3273_v30 = vadd.f32 %v309_v29, %v301_v28 }
 0x1c9   :  { %3008 = vtanh.f32 %v3273_v30 }
 0x1d6   :  { %v3009_v45 = vpop.eup %3008 }
 0x1d7   :  { %314 = vrot.lane.b32.xlu1 %v3009_v45, %s3146_s30 }
 0x249   :  { %v315_v47 = vpop.permute.xlu1 %314 }
 0x24a   :  { %v317_v48 = vmul.f32 %v3007_v24, %v315_v47 }
 0x24c   :  { %392 = vrot.lane.b32.xlu0 %v317_v48, %s3147_s10 }
 0x2be   :  { %v393_v51 = vpop.permute.xlu0 %392 }
 0x2bf   :  { %2753 = vmatmul.mubr.msk.f32.vlgmr.msra.gmra.mxu0 %vm36_vm0, %v393_v51  ;;  %2764 = vmatmul.mubr.msk.f32.vlgmr.msra.gmra.mxu1 %vm36_vm0, %v393_v51 }
 0x2c0   :  { %2778 = vmatpush3.msra.mxu1 %v3285_v33  ;;  %2767 = vmatpush3.msra.mxu0 %v3291_v34 }
 0x2c1   :  { %2779 = vmatprep.subr.mxu1 %v3144_v2  ;;  %2768 = vmatprep.subr.mxu0 %v3144_v2 }
 0x2c2   :  { %2780 = vmatpush3.msra.mxu1 %v3303_v36  ;;  %2769 = vmatpush3.msra.mxu0 %v3296_v35 }
 0x2c3   :  { %2781 = vmatprep.subr.mxu1 %v3144_v2  ;;  %2770 = vmatprep.subr.mxu0 %v3144_v2 }
 0x2c4   :  { %2782 = vmatpush3.msra.mxu1 %v3332_v41  ;;  %2771 = vmatpush3.msra.mxu0 %v3313_v38 }
 0x2c5   :  { %2783 = vmatprep.subr.mxu1 %v3144_v2  ;;  %2772 = vmatprep.subr.mxu0 %v3144_v2 }
 0x2c6   :  { %2784 = vmatpush3.msra.mxu1 %v3353_v46  ;;  %2785 = vmatprep.mubr.msk.f32.mxu1 %vm3145_vm1, %v3144_v2 }
 0x2c7   :  { %2773 = vmatpush3.msra.mxu0 %v3325_v40  ;;  %2774 = vmatprep.mubr.msk.f32.mxu0 %vm3145_vm1, %v3144_v2 }
 0x2c8   :  { %2788 = vmatprep.subr.mxu0 %v3144_v2  ;;  %2799 = vmatprep.subr.mxu1 %v3144_v2 }
 0x37f   :  { %v462_v60 = vpop.f32.mrf.mxu0  ;;  %v569_v61 = vpop.f32.mrf.mxu1 }
 0x380   :  { %v463_v62 = vadd.f32 %v462_v60, %v387_v49  ;;  %v573_v63 = vadd.f32 %v569_v61, %v170_v58  ;;  %v175_v60 = vadd.f32 %v3267_v14, %v3395_v53 }
 0x381   :  { %v2754_v0 = vpop.f32.mrf.mxu0  ;;  %v2765_v1 = vpop.f32.mrf.mxu1 }
 0x382   :  { %v472_v5 = vadd.f32 %v3410_v59, %v463_v62  ;;  %3010 = vtanh.f32 %v573_v63  ;;  %v2529_v11 = vmul.f32 -1.442695, %v573_v63 }
 0x384   :  { %3012 = vtanh.f32 %v472_v5  ;;  %v2527_v12 = vmul.f32 -1.442695, %v472_v5 }
 0x385   :  { %3014 = vpow2.f32 %v2529_v11 }
 0x386   :  { %3016 = vpow2.f32 %v2527_v12 }
 0x38f   :  { %v3011_v6 = vpop.eup %3010 }
 0x390   :  { %583 = vrot.lane.b32.xlu0 %v3011_v6, %s3146_s30 }
 0x391   :  { %v3013_v8 = vpop.eup %3012 }
 0x392   :  { %486 = vrot.lane.b32.xlu1 %v3013_v8, %s3146_s30  ;;  %v3015_v13 = vpop.eup %3014 }
 0x393   :  { %v3017_v15 = vpop.eup %3016  ;;  %v577_v16 = vadd.f32 1.0, %v3015_v13 }
 0x394   :  { %v476_v17 = vadd.f32 1.0, %v3017_v15 }
 0x395   :  { %3018 = vrcp.f32 %v577_v16 }
 0x396   :  { %481 = vrot.lane.b32.xlu1 %v214_v10, %s3147_s10  ;;  %3020 = vrcp.f32 %v476_v17 }
 0x3a2   :  { %v3019_v18 = vpop.eup %3018 }
 0x3a3   :  { %v3021_v21 = vpop.eup %3020  ;;  %v581_v25 = vmul.f32 %v3019_v18, %v3273_v30 }
 0x402   :  { %v584_v19 = vpop.permute.xlu0 %583 }
 0x403   :  { %v586_v20 = vmul.f32 %v3019_v18, %v584_v19 }
 0x404   :  { %v487_v22 = vpop.permute.xlu1 %486 }
 0x405   :  { %v489_v23 = vmul.f32 %v3021_v21, %v487_v22  ;;  %588 = vrot.lane.b32.xlu1 %v586_v20, %s3147_s10 }
 0x407   :  { %491 = vrot.lane.b32.xlu0 %v489_v23, %s3147_s10 }
 0x408   :  { %v482_v24 = vpop.permute.xlu1 %481 }
 0x409   :  { %v484_v27 = vmul.f32 %v3021_v21, %v482_v24 }
 0x477   :  { %v589_v26 = vpop.permute.xlu1 %588 }
 0x478   :  { %v3419_v28 = vadd.f32 %v589_v26, %v581_v25 }
 0x479   :  { %v492_v29 = vpop.permute.xlu0 %491 }
 0x47a   :  { %3022 = vtanh.f32 %v3419_v28  ;;  %v3422_v31 = vadd.f32 %v492_v29, %v484_v27 }
 0x47c   :  { %3024 = vtanh.f32 %v3422_v31 }
 0x487   :  { %v3023_v32 = vpop.eup %3022 }
 0x488   :  { %594 = vrot.lane.b32.xlu1 %v3023_v32, %s3146_s30 }
 0x489   :  { %v3025_v37 = vpop.eup %3024 }
 0x48a   :  { %497 = vrot.lane.b32.xlu0 %v3025_v37, %s3146_s30 }
 0x4fa   :  { %v595_v39 = vpop.permute.xlu1 %594 }
 0x4fb   :  { %v597_v42 = vmul.f32 %v3019_v18, %v595_v39 }
 0x4fc   :  { %v498_v30 = vpop.permute.xlu0 %497 }
 0x4fd   :  { %v500_v43 = vmul.f32 %v3021_v21, %v498_v30  ;;  %674 = vrot.lane.b32.xlu1 %v597_v42, %s3147_s10 }
 0x4ff   :  { %599 = vrot.lane.b32.xlu0 %v500_v43, %s3147_s10  ;;  %v180_v43 = vadd.f32 %v3393_v52, %v3267_v14 }
 0x56f   :  { %v675_v44 = vpop.permute.xlu1 %674 }
 0x570   :  { %2786 = vmatmul.mubr.msk.f32.vlgmr.msra.gmra.mxu1 %vm36_vm0, %v675_v44 }
 0x571   :  { %v600_v45 = vpop.permute.xlu0 %599  ;;  %2800 = vmatpush3.msra.mxu1 %v3291_v34  ;;  %2807 = vmatprep.mubr.msk.f32.mxu1 %vm3145_vm1, %v3144_v2 }
 0x572   :  { %2775 = vmatmul.mubr.msk.f32.vlgmr.msra.gmra.mxu0 %vm36_vm0, %v600_v45  ;;  %2801 = vmatprep.subr.mxu1 %v3144_v2 }
 0x573   :  { %2789 = vmatpush3.msra.mxu0 %v3209_v3  ;;  %2796 = vmatprep.mubr.msk.f32.mxu0 %vm3145_vm1, %v3144_v2 }
 0x574   :  { %2790 = vmatprep.subr.mxu0 %v3144_v2  ;;  %2802 = vmatpush3.msra.mxu1 %v3296_v35 }
 0x575   :  { %2791 = vmatpush3.msra.mxu0 %v3225_v4  ;;  %2803 = vmatprep.subr.mxu1 %v3144_v2 }
 0x576   :  { %2792 = vmatprep.subr.mxu0 %v3144_v2  ;;  %2804 = vmatpush3.msra.mxu1 %v3313_v38 }
 0x577   :  { %2793 = vmatpush3.msra.mxu0 %v3238_v7  ;;  %2805 = vmatprep.subr.mxu1 %v3144_v2 }
 0x578   :  { %2794 = vmatprep.subr.mxu0 %v3144_v2  ;;  %2806 = vmatpush3.msra.mxu1 %v3325_v40 }
 0x579   :  { %2795 = vmatpush3.msra.mxu0 %v3248_v9  ;;  %2821 = vmatprep.subr.mxu1 %v3144_v2 }
 0x57a   :  { %2797 = vmatmul.mubr.msk.f32.vlgmr.msra.gmra.mxu0 %vm36_vm0, %v675_v44  ;;  %2810 = vmatprep.subr.mxu0 %v3144_v2 }
 0x57b   :  { %2811 = vmatpush3.msra.mxu0 %v3285_v33  ;;  %2818 = vmatprep.mubr.msk.f32.mxu0 %vm3145_vm1, %v3144_v2 }
 0x57c   :  { %2812 = vmatprep.subr.mxu0 %v3144_v2 }
 0x57d   :  { %2813 = vmatpush3.msra.mxu0 %v3303_v36 }
 0x57e   :  { %2814 = vmatprep.subr.mxu0 %v3144_v2 }
 0x57f   :  { %2815 = vmatpush3.msra.mxu0 %v3332_v41 }
 0x580   :  { %2816 = vmatprep.subr.mxu0 %v3144_v2 }
 0x581   :  { %2817 = vmatpush3.msra.mxu0 %v3353_v46 }
 0x582   :  { %2832 = vmatprep.subr.mxu0 %v3144_v2 }
 0x630   :  { %v744_v47 = vpop.f32.mrf.mxu1 }
 0x632   :  { %v669_v48 = vpop.f32.mrf.mxu0  ;;  %v2787_v49 = vpop.f32.mrf.mxu1 }
 0x633   :  { %v745_v50 = vadd.f32 %v744_v47, %v669_v48 }
 0x634   :  { %v2776_v51 = vpop.f32.mrf.mxu0 }
 0x635   :  { %v748_v58 = vadd.f32 %v3410_v59, %v745_v50 }
 0x637   :  { %3026 = vtanh.f32 %v748_v58  ;;  %v2532_v5 = vmul.f32 -1.442695, %v748_v58 }
 0x63a   :  { %v841_v61 = vpop.f32.mrf.mxu0 }
 0x63b   :  { %v845_v62 = vadd.f32 %v841_v61, %v175_v60 }
 0x63c   :  { %v2798_v63 = vpop.f32.mrf.mxu0 }
 0x63d   :  { %3028 = vtanh.f32 %v845_v62  ;;  %v2534_v6 = vmul.f32 -1.442695, %v845_v62 }
 0x63e   :  { %3030 = vpow2.f32 %v2532_v5 }
 0x63f   :  { %3032 = vpow2.f32 %v2534_v6 }
 0x644   :  { %v3027_v0 = vpop.eup %3026 }
 0x645   :  { %758 = vrot.lane.b32.xlu0 %v3027_v0, %s3146_s30 }
 0x64a   :  { %v3029_v1 = vpop.eup %3028 }
 0x64b   :  { %855 = vrot.lane.b32.xlu1 %v3029_v1, %s3146_s30  ;;  %v3031_v8 = vpop.eup %3030 }
 0x64c   :  { %v752_v10 = vadd.f32 1.0, %v3031_v8  ;;  %v3033_v11 = vpop.eup %3032 }
 0x64d   :  { %v849_v12 = vadd.f32 1.0, %v3033_v11 }
 0x64e   :  { %3034 = vrcp.f32 %v752_v10 }
 0x64f   :  { %3036 = vrcp.f32 %v849_v12 }
 0x65b   :  { %v3035_v53 = vpop.eup %3034 }
 0x65c   :  { %v3037_v16 = vpop.eup %3036  ;;  %v756_v19 = vmul.f32 %v3035_v53, %v3422_v31 }
 0x65d   :  { %v853_v22 = vmul.f32 %v3037_v16, %v3419_v28 }
 0x6b7   :  { %v759_v13 = vpop.permute.xlu0 %758 }
 0x6b8   :  { %v761_v15 = vmul.f32 %v3035_v53, %v759_v13 }
 0x6ba   :  { %763 = vrot.lane.b32.xlu0 %v761_v15, %s3147_s10 }
 0x6bd   :  { %v856_v17 = vpop.permute.xlu1 %855 }
 0x6be   :  { %v858_v18 = vmul.f32 %v3037_v16, %v856_v17 }
 0x6c0   :  { %860 = vrot.lane.b32.xlu1 %v858_v18, %s3147_s10 }
 0x72c   :  { %v764_v20 = vpop.permute.xlu0 %763 }
 0x72d   :  { %v3470_v21 = vadd.f32 %v764_v20, %v756_v19 }
 0x72f   :  { %3038 = vtanh.f32 %v3470_v21 }
 0x732   :  { %v861_v23 = vpop.permute.xlu1 %860 }
 0x733   :  { %v3474_v24 = vadd.f32 %v861_v23, %v853_v22 }
 0x735   :  { %3040 = vtanh.f32 %v3474_v24 }
 0x73c   :  { %v3039_v25 = vpop.eup %3038 }
 0x73d   :  { %769 = vrot.lane.b32.xlu0 %v3039_v25, %s3146_s30 }
 0x742   :  { %v3041_v26 = vpop.eup %3040 }
 0x743   :  { %866 = vrot.lane.b32.xlu1 %v3041_v26, %s3146_s30 }
 0x7af   :  { %v770_v27 = vpop.permute.xlu0 %769 }
 0x7b0   :  { %v772_v29 = vmul.f32 %v3035_v53, %v770_v27 }
 0x7b2   :  { %871 = vrot.lane.b32.xlu0 %v772_v29, %s3147_s10 }
 0x7b5   :  { %v867_v31 = vpop.permute.xlu1 %866 }
 0x7b6   :  { %v869_v32 = vmul.f32 %v3037_v16, %v867_v31 }
 0x7b8   :  { %946 = vrot.lane.b32.xlu1 %v869_v32, %s3147_s10 }
 0x824   :  { %v872_v28 = vpop.permute.xlu0 %871 }
 0x825   :  { %2808 = vmatmul.mubr.msk.f32.vlgmr.msra.gmra.mxu1 %vm36_vm0, %v872_v28 }
 0x826   :  { %2822 = vmatpush3.msra.mxu1 %v3209_v3  ;;  %2829 = vmatprep.mubr.msk.f32.mxu1 %vm3145_vm1, %v3144_v2 }
 0x827   :  { %2823 = vmatprep.subr.mxu1 %v3144_v2 }
 0x828   :  { %2824 = vmatpush3.msra.mxu1 %v3225_v4 }
 0x829   :  { %2825 = vmatprep.subr.mxu1 %v3144_v2 }
 0x82a   :  { %2826 = vmatpush3.msra.mxu1 %v3238_v7  ;;  %v947_v37 = vpop.permute.xlu1 %946 }
 0x82b   :  { %2819 = vmatmul.mubr.msk.f32.vlgmr.msra.gmra.mxu0 %vm36_vm0, %v947_v37  ;;  %2827 = vmatprep.subr.mxu1 %v3144_v2 }
 0x82c   :  { %2828 = vmatpush3.msra.mxu1 %v3248_v9  ;;  %2833 = vmatpush3.msra.mxu0 %v3291_v34 }
 0x82d   :  { %2830 = vmatmul.mubr.msk.f32.vlgmr.msra.gmra.mxu1 %vm36_vm0, %v947_v37  ;;  %2843 = vmatprep.subr.mxu1 %v3144_v2  ;;  %v185_v37 = vadd.f32 %v3267_v14, %v3399_v55 }
 0x82e   :  { %2834 = vmatprep.subr.mxu0 %v3144_v2  ;;  %2844 = vmatpush3.msra.mxu1 %v3285_v33 }
 0x82f   :  { %2835 = vmatpush3.msra.mxu0 %v3296_v35  ;;  %2845 = vmatprep.subr.mxu1 %v3144_v2 }
 0x830   :  { %2836 = vmatprep.subr.mxu0 %v3144_v2  ;;  %2846 = vmatpush3.msra.mxu1 %v3303_v36 }
 0x831   :  { %2837 = vmatpush3.msra.mxu0 %v3313_v38  ;;  %2847 = vmatprep.subr.mxu1 %v3144_v2 }
 0x832   :  { %2838 = vmatprep.subr.mxu0 %v3144_v2  ;;  %2848 = vmatpush3.msra.mxu1 %v3332_v41 }
 0x833   :  { %2839 = vmatpush3.msra.mxu0 %v3325_v40  ;;  %2849 = vmatprep.subr.mxu1 %v3144_v2 }
 0x834   :  { %2850 = vmatpush3.msra.mxu1 %v3353_v46  ;;  %2851 = vmatprep.mubr.msk.f32.mxu1 %vm3145_vm1, %v3144_v2 }
 0x835   :  { %2840 = vmatprep.mubr.msk.f32.mxu0 %vm3145_vm1, %v3144_v2  ;;  %2854 = vmatprep.subr.mxu0 %v3144_v2 }
 0x836   :  { %2865 = vmatprep.subr.mxu1 %v3144_v2 }
 0x8e5   :  { %v941_v39 = vpop.f32.mrf.mxu1 }
 0x8e7   :  { %v2809_v42 = vpop.f32.mrf.mxu1 }
 0x8eb   :  { %v1016_v30 = vpop.f32.mrf.mxu0 }
 0x8ec   :  { %v1017_v44 = vadd.f32 %v1016_v30, %v941_v39 }
 0x8ed   :  { %v2820_v45 = vpop.f32.mrf.mxu0  ;;  %v1113_v47 = vpop.f32.mrf.mxu1 }
 0x8ee   :  { %v1020_v48 = vadd.f32 %v3410_v59, %v1017_v44  ;;  %v1117_v49 = vadd.f32 %v1113_v47, %v180_v43 }
 0x8ef   :  { %v2831_v50 = vpop.f32.mrf.mxu1 }
 0x8f0   :  { %3042 = vtanh.f32 %v1020_v48  ;;  %v2537_v60 = vmul.f32 -1.442695, %v1020_v48  ;;  %v2539_v61 = vmul.f32 -1.442695, %v1117_v49 }
 0x8f1   :  { %3044 = vtanh.f32 %v1117_v49 }
 0x8f2   :  { %3046 = vpow2.f32 %v2537_v60 }
 0x8f3   :  { %3048 = vpow2.f32 %v2539_v61 }
 0x8fd   :  { %v3043_v51 = vpop.eup %3042 }
 0x8fe   :  { %v3045_v58 = vpop.eup %3044  ;;  %1030 = vrot.lane.b32.xlu0 %v3043_v51, %s3146_s30 }
 0x8ff   :  { %1127 = vrot.lane.b32.xlu1 %v3045_v58, %s3146_s30  ;;  %v3047_v52 = vpop.eup %3046 }
 0x900   :  { %v3049_v62 = vpop.eup %3048  ;;  %v1024_v63 = vadd.f32 1.0, %v3047_v52 }
 0x901   :  { %v1121_v0 = vadd.f32 1.0, %v3049_v62 }
 0x902   :  { %3050 = vrcp.f32 %v1024_v63 }
 0x903   :  { %3052 = vrcp.f32 %v1121_v0 }
 0x90f   :  { %v3051_v1 = vpop.eup %3050 }
 0x910   :  { %v3053_v6 = vpop.eup %3052  ;;  %v1028_v12 = vmul.f32 %v3051_v1, %v3470_v21 }
 0x911   :  { %v1125_v53 = vmul.f32 %v3053_v6, %v3474_v24 }
 0x970   :  { %v1031_v5 = vpop.permute.xlu0 %1030 }
 0x971   :  { %v1128_v8 = vpop.permute.xlu1 %1127  ;;  %v1033_v10 = vmul.f32 %v3051_v1, %v1031_v5 }
 0x972   :  { %v1130_v11 = vmul.f32 %v3053_v6, %v1128_v8 }
 0x973   :  { %1035 = vrot.lane.b32.xlu0 %v1033_v10, %s3147_s10 }
 0x974   :  { %1132 = vrot.lane.b32.xlu1 %v1130_v11, %s3147_s10 }
 0x9e5   :  { %v1036_v13 = vpop.permute.xlu0 %1035 }
 0x9e6   :  { %v1133_v15 = vpop.permute.xlu1 %1132  ;;  %v3523_v16 = vadd.f32 %v1036_v13, %v1028_v12 }
 0x9e7   :  { %v3525_v17 = vadd.f32 %v1133_v15, %v1125_v53 }
 0x9e8   :  { %3054 = vtanh.f32 %v3523_v16 }
 0x9e9   :  { %3056 = vtanh.f32 %v3525_v17 }
 0x9f5   :  { %v3055_v18 = vpop.eup %3054 }
 0x9f6   :  { %v3057_v19 = vpop.eup %3056  ;;  %1041 = vrot.lane.b32.xlu0 %v3055_v18, %s3146_s30  ;;  %v190_v18 = vadd.f32 %v3397_v54, %v3267_v14 }
 0x9f7   :  { %1138 = vrot.lane.b32.xlu1 %v3057_v19, %s3146_s30 }
 0xa68   :  { %v1042_v20 = vpop.permute.xlu0 %1041 }
 0xa69   :  { %v1139_v21 = vpop.permute.xlu1 %1138  ;;  %v1044_v22 = vmul.f32 %v3051_v1, %v1042_v20 }
 0xa6a   :  { %v1141_v23 = vmul.f32 %v3053_v6, %v1139_v21 }
 0xa6b   :  { %1143 = vrot.lane.b32.xlu0 %v1044_v22, %s3147_s10 }
 0xa6c   :  { %1218 = vrot.lane.b32.xlu1 %v1141_v23, %s3147_s10 }
 0xadd   :  { %v1144_v24 = vpop.permute.xlu0 %1143 }
 0xade   :  { %v1219_v25 = vpop.permute.xlu1 %1218  ;;  %2841 = vmatmul.mubr.msk.f32.vlgmr.msra.gmra.mxu0 %vm36_vm0, %v1144_v24 }
 0xadf   :  { %2852 = vmatmul.mubr.msk.f32.vlgmr.msra.gmra.mxu1 %vm36_vm0, %v1219_v25  ;;  %2855 = vmatpush3.msra.mxu0 %v3209_v3 }
 0xae0   :  { %2856 = vmatprep.subr.mxu0 %v3144_v2  ;;  %2862 = vmatprep.mubr.msk.f32.mxu0 %vm3145_vm1, %v3144_v2 }
 0xae1   :  { %2857 = vmatpush3.msra.mxu0 %v3225_v4  ;;  %2866 = vmatpush3.msra.mxu1 %v3291_v34 }
 0xae2   :  { %2858 = vmatprep.subr.mxu0 %v3144_v2  ;;  %2867 = vmatprep.subr.mxu1 %v3144_v2 }
 0xae3   :  { %2859 = vmatpush3.msra.mxu0 %v3238_v7  ;;  %2868 = vmatpush3.msra.mxu1 %v3296_v35 }
 0xae4   :  { %2860 = vmatprep.subr.mxu0 %v3144_v2  ;;  %2869 = vmatprep.subr.mxu1 %v3144_v2 }
 0xae5   :  { %2861 = vmatpush3.msra.mxu0 %v3248_v9  ;;  %2870 = vmatpush3.msra.mxu1 %v3313_v38 }
 0xae6   :  { %2863 = vmatmul.mubr.msk.f32.vlgmr.msra.gmra.mxu0 %vm36_vm0, %v1219_v25  ;;  %2871 = vmatprep.subr.mxu1 %v3144_v2 }
 0xae7   :  { %2876 = vmatprep.subr.mxu0 %v3144_v2  ;;  %2872 = vmatpush3.msra.mxu1 %v3325_v40 }
 0xae8   :  { %2877 = vmatpush3.msra.mxu0 %v3285_v33  ;;  %2873 = vmatprep.mubr.msk.f32.mxu1 %vm3145_vm1, %v3144_v2 }
 0xae9   :  { %2878 = vmatprep.subr.mxu0 %v3144_v2  ;;  %2887 = vmatprep.subr.mxu1 %v3144_v2 }
 0xaea   :  { %2879 = vmatpush3.msra.mxu0 %v3303_v36  ;;  %2884 = vmatprep.mubr.msk.f32.mxu0 %vm3145_vm1, %v3144_v2 }
 0xaeb   :  { %2880 = vmatprep.subr.mxu0 %v3144_v2 }
 0xaec   :  { %2881 = vmatpush3.msra.mxu0 %v3332_v41 }
 0xaed   :  { %2882 = vmatprep.subr.mxu0 %v3144_v2 }
 0xaee   :  { %2883 = vmatpush3.msra.mxu0 %v3353_v46 }
 0xaef   :  { %2898 = vmatprep.subr.mxu0 %v3144_v2 }
 0xb9e   :  { %v1213_v26 = vpop.f32.mrf.mxu0 }
 0xb9f   :  { %v1288_v27 = vpop.f32.mrf.mxu1 }
 0xba0   :  { %v1289_v29 = vadd.f32 %v1288_v27, %v1213_v26  ;;  %v2842_v31 = vpop.f32.mrf.mxu0 }
 0xba1   :  { %v2853_v32 = vpop.f32.mrf.mxu1 }
 0xba2   :  { %v1292_v28 = vadd.f32 %v3410_v59, %v1289_v29 }
 0xba4   :  { %3058 = vtanh.f32 %v1292_v28  ;;  %v2542_v45 = vmul.f32 -1.442695, %v1292_v28 }
 0xba6   :  { %v1385_v39 = vpop.f32.mrf.mxu0 }
 0xba7   :  { %v1389_v42 = vadd.f32 %v1385_v39, %v185_v37 }
 0xba8   :  { %v2864_v30 = vpop.f32.mrf.mxu0 }
 0xba9   :  { %3060 = vtanh.f32 %v1389_v42  ;;  %v2544_v47 = vmul.f32 -1.442695, %v1389_v42 }
 0xbaa   :  { %3062 = vpow2.f32 %v2542_v45 }
 0xbab   :  { %3064 = vpow2.f32 %v2544_v47 }
 0xbb1   :  { %v3059_v43 = vpop.eup %3058 }
 0xbb2   :  { %1302 = vrot.lane.b32.xlu0 %v3059_v43, %s3146_s30 }
 0xbb6   :  { %v3061_v44 = vpop.eup %3060 }
 0xbb7   :  { %1399 = vrot.lane.b32.xlu1 %v3061_v44, %s3146_s30  ;;  %v3063_v48 = vpop.eup %3062 }
 0xbb8   :  { %v1296_v49 = vadd.f32 1.0, %v3063_v48  ;;  %v3065_v50 = vpop.eup %3064 }
 0xbb9   :  { %v1393_v51 = vadd.f32 1.0, %v3065_v50 }
 0xbba   :  { %3066 = vrcp.f32 %v1296_v49 }
 0xbbb   :  { %3068 = vrcp.f32 %v1393_v51 }
 0xbc7   :  { %v3067_v55 = vpop.eup %3066 }
 0xbc8   :  { %v3069_v61 = vpop.eup %3068  ;;  %v1300_v63 = vmul.f32 %v3067_v55, %v3523_v16 }
 0xbc9   :  { %v1397_v5 = vmul.f32 %v3069_v61, %v3525_v17 }
 0xc24   :  { %v1303_v58 = vpop.permute.xlu0 %1302 }
 0xc25   :  { %v1305_v60 = vmul.f32 %v3067_v55, %v1303_v58 }
 0xc27   :  { %1307 = vrot.lane.b32.xlu0 %v1305_v60, %s3147_s10 }
 0xc29   :  { %v1400_v52 = vpop.permute.xlu1 %1399 }
 0xc2a   :  { %v1402_v62 = vmul.f32 %v3069_v61, %v1400_v52 }
 0xc2c   :  { %1404 = vrot.lane.b32.xlu1 %v1402_v62, %s3147_s10 }
 0xc99   :  { %v1308_v0 = vpop.permute.xlu0 %1307 }
 0xc9a   :  { %v3574_v1 = vadd.f32 %v1308_v0, %v1300_v63  ;;  %v3642_v63 = vld [vmem:[%s3813_s2 + $0x18] sm:$0xff]  ;;  %v3651_v0 = vld [vmem:[%s3813_s2 + $0x10] sm:$0xff] }
 0xc9c   :  { %3070 = vtanh.f32 %v3574_v1 }
 0xc9e   :  { %v1405_v6 = vpop.permute.xlu1 %1404 }
 0xc9f   :  { %v3578_v8 = vadd.f32 %v1405_v6, %v1397_v5  ;;  %v3694_v6 = vld [vmem:[%s3815_s3] ss:$0 sm:$0xff]  ;;  %s3148_s3 = smov 96  }
 0xca1   :  { %3072 = vtanh.f32 %v3578_v8 }
 0xca9   :  { %v3071_v10 = vpop.eup %3070 }
 0xcaa   :  { %1313 = vrot.lane.b32.xlu0 %v3071_v10, %s3146_s30 }
 0xcae   :  { %v3073_v11 = vpop.eup %3072 }
 0xcaf   :  { %1410 = vrot.lane.b32.xlu1 %v3073_v11, %s3146_s30 }
 0xd1c   :  { %v1314_v12 = vpop.permute.xlu0 %1313 }
 0xd1d   :  { %v1316_v53 = vmul.f32 %v3067_v55, %v1314_v12 }
 0xd1f   :  { %1415 = vrot.lane.b32.xlu0 %v1316_v53, %s3147_s10 }
 0xd21   :  { %v1411_v13 = vpop.permute.xlu1 %1410 }
 0xd22   :  { %v1413_v15 = vmul.f32 %v3069_v61, %v1411_v13 }
 0xd24   :  { %1490 = vrot.lane.b32.xlu1 %v1413_v15, %s3147_s10 }
 0xd91   :  { %v1416_v16 = vpop.permute.xlu0 %1415 }
 0xd92   :  { %2874 = vmatmul.mubr.msk.f32.vlgmr.msra.gmra.mxu1 %vm36_vm0, %v1416_v16 }
 0xd93   :  { %2888 = vmatpush3.msra.mxu1 %v3209_v3  ;;  %2895 = vmatprep.mubr.msk.f32.mxu1 %vm3145_vm1, %v3144_v2 }
 0xd94   :  { %2889 = vmatprep.subr.mxu1 %v3144_v2 }
 0xd95   :  { %2890 = vmatpush3.msra.mxu1 %v3225_v4 }
 0xd96   :  { %2891 = vmatprep.subr.mxu1 %v3144_v2  ;;  %v1491_v17 = vpop.permute.xlu1 %1490 }
 0xd97   :  { %2892 = vmatpush3.msra.mxu1 %v3238_v7  ;;  %2885 = vmatmul.mubr.msk.f32.vlgmr.msra.gmra.mxu0 %vm36_vm0, %v1491_v17 }
 0xd98   :  { %2893 = vmatprep.subr.mxu1 %v3144_v2  ;;  %2899 = vmatpush3.msra.mxu0 %v3291_v34 }
 0xd99   :  { %2894 = vmatpush3.msra.mxu1 %v3248_v9  ;;  %2900 = vmatprep.subr.mxu0 %v3144_v2 }
 0xd9a   :  { %2896 = vmatmul.mubr.msk.f32.vlgmr.msra.gmra.mxu1 %vm36_vm0, %v1491_v17  ;;  %2909 = vmatprep.subr.mxu1 %v3144_v2 }
 0xd9b   :  { %2910 = vmatpush3.msra.mxu1 %v3285_v33  ;;  %2901 = vmatpush3.msra.mxu0 %v3296_v35 }
 0xd9c   :  { %2911 = vmatprep.subr.mxu1 %v3144_v2  ;;  %2902 = vmatprep.subr.mxu0 %v3144_v2 }
 0xd9d   :  { %2912 = vmatpush3.msra.mxu1 %v3303_v36  ;;  %2903 = vmatpush3.msra.mxu0 %v3313_v38 }
 0xd9e   :  { %2913 = vmatprep.subr.mxu1 %v3144_v2  ;;  %2904 = vmatprep.subr.mxu0 %v3144_v2 }
 0xd9f   :  { %2914 = vmatpush3.msra.mxu1 %v3332_v41  ;;  %2905 = vmatpush3.msra.mxu0 %v3325_v40 }
 0xda0   :  { %2915 = vmatprep.subr.mxu1 %v3144_v2  ;;  %2917 = vmatprep.mubr.msk.f32.mxu1 %vm3145_vm1, %v3144_v2 }
 0xda1   :  { %2916 = vmatpush3.msra.mxu1 %v3353_v46  ;;  %2906 = vmatprep.mubr.msk.f32.mxu0 %vm3145_vm1, %v3144_v2 }
 0xda2   :  { %2920 = vmatprep.subr.mxu0 %v3144_v2  ;;  %2931 = vmatprep.subr.mxu1 %v3144_v2 }
 0xe52   :  { %v1485_v3 = vpop.f32.mrf.mxu1 }
 0xe54   :  { %v2875_v4 = vpop.f32.mrf.mxu1 }
 0xe57   :  { %v1560_v7 = vpop.f32.mrf.mxu0 }
 0xe58   :  { %v1561_v9 = vadd.f32 %v1560_v7, %v1485_v3 }
 0xe59   :  { %v2886_v19 = vpop.f32.mrf.mxu0 }
 0xe5a   :  { %v1564_v20 = vadd.f32 %v3410_v59, %v1561_v9  ;;  %v1657_v21 = vpop.f32.mrf.mxu1 }
 0xe5b   :  { %v1661_v22 = vadd.f32 %v1657_v21, %v190_v18 }
 0xe5c   :  { %3074 = vtanh.f32 %v1564_v20  ;;  %v2897_v23 = vpop.f32.mrf.mxu1  ;;  %v2547_v26 = vmul.f32 -1.442695, %v1564_v20 }
 0xe5d   :  { %3076 = vtanh.f32 %v1661_v22  ;;  %v2549_v27 = vmul.f32 -1.442695, %v1661_v22 }
 0xe5e   :  { %3078 = vpow2.f32 %v2547_v26 }
 0xe5f   :  { %3080 = vpow2.f32 %v2549_v27 }
 0xe69   :  { %v3075_v24 = vpop.eup %3074 }
 0xe6a   :  { %v3077_v25 = vpop.eup %3076  ;;  %1574 = vrot.lane.b32.xlu0 %v3075_v24, %s3146_s30 }
 0xe6b   :  { %1671 = vrot.lane.b32.xlu1 %v3077_v25, %s3146_s30  ;;  %v3079_v29 = vpop.eup %3078 }
 0xe6c   :  { %v3081_v14 = vpop.eup %3080  ;;  %v1568_v54 = vadd.f32 1.0, %v3079_v29 }
 0xe6d   :  { %v1665_v31 = vadd.f32 1.0, %v3081_v14 }
 0xe6e   :  { %3082 = vrcp.f32 %v1568_v54 }
 0xe6f   :  { %3084 = vrcp.f32 %v1665_v31 }
 0xe7b   :  { %v3083_v32 = vpop.eup %3082 }
 0xe7c   :  { %v3085_v37 = vpop.eup %3084  ;;  %v1572_v43 = vmul.f32 %v3083_v32, %v3574_v1  ;;  %v3660_v1 = vld [vmem:[%s3813_s2 + $0x8] sm:$0xff] }
 0xe7d   :  { %v1669_v44 = vmul.f32 %v3085_v37, %v3578_v8 }
 0xedc   :  { %v1575_v28 = vpop.permute.xlu0 %1574 }
 0xedd   :  { %v1672_v39 = vpop.permute.xlu1 %1671  ;;  %v1577_v42 = vmul.f32 %v3083_v32, %v1575_v28 }
 0xede   :  { %v1674_v30 = vmul.f32 %v3085_v37, %v1672_v39  ;;  %v3136_v39 = vld [vmem:[%s3816_s4 + $0x18] sm:$0xff] }
 0xedf   :  { %1579 = vrot.lane.b32.xlu0 %v1577_v42, %s3147_s10  ;;  %v3137_v42 = vld [vmem:[%s3817_s5 + $0x10] sm:$0xff] }
 0xee0   :  { %1676 = vrot.lane.b32.xlu1 %v1674_v30, %s3147_s10  ;;  %v3138_v30 = vld [vmem:[%s3816_s4 + $0x10] sm:$0xff] }
 0xf51   :  { %v1580_v45 = vpop.permute.xlu0 %1579 }
 0xf52   :  { %v1677_v47 = vpop.permute.xlu1 %1676  ;;  %v3627_v48 = vadd.f32 %v1580_v45, %v1572_v43  ;;  %v3139_v43 = vld [vmem:[%s3817_s5 + $0x8] sm:$0xff]  ;;  %v3141_v45 = vld [vmem:[%s3817_s5] sm:$0xff] }
 0xf53   :  { %v3629_v49 = vadd.f32 %v1677_v47, %v1669_v44  ;;  %v3140_v44 = vld [vmem:[%s3816_s4 + $0x8] sm:$0xff]  ;;  %v3142_v47 = vld [vmem:[%s3816_s4] sm:$0xff] }
 0xf54   :  { %3086 = vtanh.f32 %v3627_v48 }
 0xf55   :  { %3088 = vtanh.f32 %v3629_v49 }
 0xf61   :  { %v3087_v50 = vpop.eup %3086 }
 0xf62   :  { %v3089_v51 = vpop.eup %3088  ;;  %1585 = vrot.lane.b32.xlu0 %v3087_v50, %s3146_s30 }
 0xf63   :  { %1682 = vrot.lane.b32.xlu1 %v3089_v51, %s3146_s30 }
 0xfd4   :  { %v1586_v55 = vpop.permute.xlu0 %1585 }
 0xfd5   :  { %v1683_v58 = vpop.permute.xlu1 %1682  ;;  %v1588_v60 = vmul.f32 %v3083_v32, %v1586_v55  ;;  %v200_v55 = vadd.f32 %v3694_v6, %v3401_v56 }
 0xfd6   :  { %v1685_v61 = vmul.f32 %v3085_v37, %v1683_v58  ;;  %v3135_v37 = vld [vmem:[%s3817_s5 + $0x18] sm:$0xff] }
 0xfd7   :  { %1687 = vrot.lane.b32.xlu0 %v1588_v60, %s3147_s10 }
 0xfd8   :  { %1762 = vrot.lane.b32.xlu1 %v1685_v61, %s3147_s10 }
0x1049   :  { %v1688_v52 = vpop.permute.xlu0 %1687 }
0x104a   :  { %v1763_v62 = vpop.permute.xlu1 %1762  ;;  %2907 = vmatmul.mubr.msk.f32.vlgmr.msra.gmra.mxu0 %vm36_vm0, %v1688_v52 }
0x104b   :  { %2918 = vmatmul.mubr.msk.f32.vlgmr.msra.gmra.mxu1 %vm36_vm0, %v1763_v62  ;;  %2921 = vmatpush3.msra.mxu0 %v3642_v63 }
0x104c   :  { %2922 = vmatprep.subr.mxu0 %v3144_v2  ;;  %2928 = vmatprep.mubr.msk.f32.mxu0 %vm3145_vm1, %v3144_v2 }
0x104d   :  { %2923 = vmatpush3.msra.mxu0 %v3651_v0  ;;  %2932 = vmatpush3.msra.mxu1 %v3291_v34  ;;  %v3669_v34 = vld [vmem:[%s3813_s2] sm:$0xff] }
0x104e   :  { %2924 = vmatprep.subr.mxu0 %v3144_v2  ;;  %2933 = vmatprep.subr.mxu1 %v3144_v2 }
0x104f   :  { %2925 = vmatpush3.msra.mxu0 %v3660_v1  ;;  %2934 = vmatpush3.msra.mxu1 %v3296_v35 }
0x1050   :  { %2926 = vmatprep.subr.mxu0 %v3144_v2  ;;  %2935 = vmatprep.subr.mxu1 %v3144_v2 }
0x1051   :  { %2927 = vmatpush3.msra.mxu0 %v3669_v34  ;;  %2936 = vmatpush3.msra.mxu1 %v3313_v38 }
0x1052   :  { %2929 = vmatmul.mubr.msk.f32.vlgmr.msra.gmra.mxu0 %vm36_vm0, %v1763_v62  ;;  %2937 = vmatprep.subr.mxu1 %v3144_v2 }
0x1053   :  { %2942 = vmatprep.subr.mxu0 %v3144_v2  ;;  %2938 = vmatpush3.msra.mxu1 %v3325_v40 }
0x1054   :  { %2943 = vmatpush3.msra.mxu0 %v3285_v33  ;;  %2939 = vmatprep.mubr.msk.f32.mxu1 %vm3145_vm1, %v3144_v2 }
0x1055   :  { %2944 = vmatprep.subr.mxu0 %v3144_v2  ;;  %2953 = vmatprep.subr.mxu1 %v3144_v2 }
0x1056   :  { %2945 = vmatpush3.msra.mxu0 %v3303_v36  ;;  %2950 = vmatprep.mubr.msk.f32.mxu0 %vm3145_vm1, %v3144_v2 }
0x1057   :  { %2946 = vmatprep.subr.mxu0 %v3144_v2 }
0x1058   :  { %2947 = vmatpush3.msra.mxu0 %v3332_v41  ;;  %v195_v41 = vadd.f32 %v3694_v6, %v3403_v57 }
0x1059   :  { %2948 = vmatprep.subr.mxu0 %v3144_v2 }
0x105a   :  { %2949 = vmatpush3.msra.mxu0 %v3353_v46 }
0x105b   :  { %2964 = vmatprep.subr.mxu0 %v3144_v2 }
0x110a   :  { %v1757_v33 = vpop.f32.mrf.mxu0 }
0x110b   :  { %v1832_v35 = vpop.f32.mrf.mxu1 }
0x110c   :  { %v1833_v38 = vadd.f32 %v1832_v35, %v1757_v33  ;;  %v2908_v40 = vpop.f32.mrf.mxu0 }
0x110d   :  { %v2919_v5 = vpop.f32.mrf.mxu1 }
0x110e   :  { %v1836_v36 = vadd.f32 %v3410_v59, %v1833_v38 }
0x1110   :  { %3090 = vtanh.f32 %v1836_v36  ;;  %v2552_v53 = vmul.f32 -1.442695, %v1836_v36 }
0x1112   :  { %v1929_v8 = vpop.f32.mrf.mxu0 }
0x1113   :  { %v1933_v46 = vadd.f32 %v1929_v8, %v195_v41 }
0x1114   :  { %v2930_v10 = vpop.f32.mrf.mxu0 }
0x1115   :  { %3092 = vtanh.f32 %v1933_v46  ;;  %v2554_v13 = vmul.f32 -1.442695, %v1933_v46 }
0x1116   :  { %3094 = vpow2.f32 %v2552_v53 }
0x1117   :  { %3096 = vpow2.f32 %v2554_v13 }
0x111d   :  { %v3091_v11 = vpop.eup %3090 }
0x111e   :  { %1846 = vrot.lane.b32.xlu0 %v3091_v11, %s3146_s30 }
0x1122   :  { %v3093_v12 = vpop.eup %3092 }
0x1123   :  { %1943 = vrot.lane.b32.xlu1 %v3093_v12, %s3146_s30  ;;  %v3095_v15 = vpop.eup %3094 }
0x1124   :  { %v1840_v16 = vadd.f32 1.0, %v3095_v15  ;;  %v3097_v17 = vpop.eup %3096 }
0x1125   :  { %v1937_v3 = vadd.f32 1.0, %v3097_v17 }
0x1126   :  { %3098 = vrcp.f32 %v1840_v16 }
0x1127   :  { %3100 = vrcp.f32 %v1937_v3 }
0x1133   :  { %v3099_v57 = vpop.eup %3098 }
0x1134   :  { %v3101_v9 = vpop.eup %3100  ;;  %v1844_v20 = vmul.f32 %v3099_v57, %v3627_v48 }
0x1135   :  { %v1941_v23 = vmul.f32 %v3101_v9, %v3629_v49 }
0x1190   :  { %v1847_v4 = vpop.permute.xlu0 %1846 }
0x1191   :  { %v1849_v7 = vmul.f32 %v3099_v57, %v1847_v4 }
0x1193   :  { %1851 = vrot.lane.b32.xlu0 %v1849_v7, %s3147_s10 }
0x1195   :  { %v1944_v18 = vpop.permute.xlu1 %1943 }
0x1196   :  { %v1946_v19 = vmul.f32 %v3101_v9, %v1944_v18 }
0x1198   :  { %1948 = vrot.lane.b32.xlu1 %v1946_v19, %s3147_s10 }
0x1205   :  { %v1852_v21 = vpop.permute.xlu0 %1851 }
0x1206   :  { %v3703_v22 = vadd.f32 %v1852_v21, %v1844_v20 }
0x1208   :  { %3102 = vtanh.f32 %v3703_v22 }
0x120a   :  { %v1949_v24 = vpop.permute.xlu1 %1948 }
0x120b   :  { %v3707_v25 = vadd.f32 %v1949_v24, %v1941_v23 }
0x120d   :  { %3104 = vtanh.f32 %v3707_v25 }
0x1215   :  { %v3103_v26 = vpop.eup %3102 }
0x1216   :  { %1857 = vrot.lane.b32.xlu0 %v3103_v26, %s3146_s30 }
0x121a   :  { %v3105_v27 = vpop.eup %3104 }
0x121b   :  { %1954 = vrot.lane.b32.xlu1 %v3105_v27, %s3146_s30 }
0x1288   :  { %v1858_v29 = vpop.permute.xlu0 %1857 }
0x1289   :  { %v1860_v14 = vmul.f32 %v3099_v57, %v1858_v29 }
0x128b   :  { %1959 = vrot.lane.b32.xlu0 %v1860_v14, %s3147_s10 }
0x128d   :  { %v1955_v54 = vpop.permute.xlu1 %1954 }
0x128e   :  { %v1957_v31 = vmul.f32 %v3101_v9, %v1955_v54 }
0x1290   :  { %2034 = vrot.lane.b32.xlu1 %v1957_v31, %s3147_s10 }
0x12fd   :  { %v1960_v32 = vpop.permute.xlu0 %1959 }
0x12fe   :  { %2940 = vmatmul.mubr.msk.f32.vlgmr.msra.gmra.mxu1 %vm36_vm0, %v1960_v32 }
0x12ff   :  { %2954 = vmatpush3.msra.mxu1 %v3642_v63  ;;  %2961 = vmatprep.mubr.msk.f32.mxu1 %vm3145_vm1, %v3144_v2 }
0x1300   :  { %2955 = vmatprep.subr.mxu1 %v3144_v2 }
0x1301   :  { %2956 = vmatpush3.msra.mxu1 %v3651_v0 }
0x1302   :  { %2957 = vmatprep.subr.mxu1 %v3144_v2  ;;  %v2035_v28 = vpop.permute.xlu1 %2034 }
0x1303   :  { %2958 = vmatpush3.msra.mxu1 %v3660_v1  ;;  %2951 = vmatmul.mubr.msk.f32.vlgmr.msra.gmra.mxu0 %vm36_vm0, %v2035_v28 }
0x1304   :  { %2959 = vmatprep.subr.mxu1 %v3144_v2  ;;  %2965 = vmatpush3.msra.mxu0 %v3135_v37  ;;  %v2428_v37 = vld [vmem:[%s3819_s7 + $0x18] sm:$0xff] }
0x1305   :  { %2960 = vmatpush3.msra.mxu1 %v3669_v34  ;;  %2966 = vmatprep.subr.mxu0 %v3144_v2 }
0x1306   :  { %2962 = vmatmul.mubr.msk.f32.vlgmr.msra.gmra.mxu1 %vm36_vm0, %v2035_v28  ;;  %2975 = vmatprep.subr.mxu1 %v3144_v2 }
0x1307   :  { %2976 = vmatpush3.msra.mxu1 %v3136_v39  ;;  %2967 = vmatpush3.msra.mxu0 %v3137_v42  ;;  %v2427_v39 = vld [vmem:[%s3819_s7 + $0x10] sm:$0xff]  ;;  %v2426_v42 = vld [vmem:[%s3819_s7 + $0x8] sm:$0xff] }
0x1308   :  { %2977 = vmatprep.subr.mxu1 %v3144_v2  ;;  %2968 = vmatprep.subr.mxu0 %v3144_v2 }
0x1309   :  { %2978 = vmatpush3.msra.mxu1 %v3138_v30  ;;  %2969 = vmatpush3.msra.mxu0 %v3139_v43  ;;  %v2425_v30 = vld [vmem:[%s3819_s7] sm:$0xff] }
0x130a   :  { %2979 = vmatprep.subr.mxu1 %v3144_v2  ;;  %2970 = vmatprep.subr.mxu0 %v3144_v2 }
0x130b   :  { %2980 = vmatpush3.msra.mxu1 %v3140_v44  ;;  %2983 = vmatprep.mubr.msk.f32.mxu1 %vm3145_vm1, %v3144_v2 }
0x130c   :  { %2981 = vmatprep.subr.mxu1 %v3144_v2  ;;  %2971 = vmatpush3.msra.mxu0 %v3141_v45 }
0x130d   :  { %2982 = vmatpush3.msra.mxu1 %v3142_v47  ;;  %2972 = vmatprep.mubr.msk.f32.mxu0 %vm3145_vm1, %v3144_v2 }
0x130e   :  { %2986 = vmatprep.subr.mxu0 %v3144_v2 }
0x13be   :  { %v2029_v48 = vpop.f32.mrf.mxu1 }
0x13c0   :  { %v2941_v49 = vpop.f32.mrf.mxu1 }
0x13c3   :  { %v2104_v50 = vpop.f32.mrf.mxu0 }
0x13c4   :  { %v2105_v51 = vadd.f32 %v2104_v50, %v2029_v48 }
0x13c5   :  { %v2952_v58 = vpop.f32.mrf.mxu0 }
0x13c6   :  { %v2108_v60 = vadd.f32 %v3410_v59, %v2105_v51  ;;  %v2201_v61 = vpop.f32.mrf.mxu1 }
0x13c7   :  { %v2205_v52 = vadd.f32 %v2201_v61, %v200_v55 }
0x13c8   :  { %3106 = vtanh.f32 %v2108_v60  ;;  %v2963_v62 = vpop.f32.mrf.mxu1  ;;  %v2557_v1 = vmul.f32 -1.442695, %v2108_v60 }
0x13c9   :  { %3108 = vtanh.f32 %v2205_v52  ;;  %v2559_v34 = vmul.f32 -1.442695, %v2205_v52 }
0x13ca   :  { %3110 = vpow2.f32 %v2557_v1 }
0x13cb   :  { %3112 = vpow2.f32 %v2559_v34 }
0x13d5   :  { %v3107_v63 = vpop.eup %3106 }
0x13d6   :  { %v3109_v0 = vpop.eup %3108  ;;  %2118 = vrot.lane.b32.xlu0 %v3107_v63, %s3146_s30 }
0x13d7   :  { %2215 = vrot.lane.b32.xlu1 %v3109_v0, %s3146_s30  ;;  %v3111_v33 = vpop.eup %3110 }
0x13d8   :  { %v3113_v56 = vpop.eup %3112  ;;  %v2112_v35 = vadd.f32 1.0, %v3111_v33 }
0x13d9   :  { %v2209_v38 = vadd.f32 1.0, %v3113_v56 }
0x13da   :  { %3114 = vrcp.f32 %v2112_v35 }
0x13db   :  { %3116 = vrcp.f32 %v2209_v38 }
0x13e7   :  { %v3115_v59 = vpop.eup %3114 }
0x13e8   :  { %v3117_v5 = vpop.eup %3116  ;;  %v2116_v8 = vmul.f32 %v3115_v59, %v3703_v22  ;;  %v3143_v22 = vld [vmem:[%s3818_s6] ss:$0 sm:$0xff] }
0x13e9   :  { %v2213_v46 = vmul.f32 %v3117_v5, %v3707_v25 }
0x1448   :  { %v2119_v40 = vpop.permute.xlu0 %2118 }
0x1449   :  { %v2216_v36 = vpop.permute.xlu1 %2215  ;;  %v2121_v6 = vmul.f32 %v3115_v59, %v2119_v40 }
0x144a   :  { %v2218_v41 = vmul.f32 %v3117_v5, %v2216_v36 }
0x144b   :  { %2123 = vrot.lane.b32.xlu0 %v2121_v6, %s3147_s10 }
0x144c   :  { %2220 = vrot.lane.b32.xlu1 %v2218_v41, %s3147_s10 }
0x14bd   :  { %v2124_v10 = vpop.permute.xlu0 %2123 }
0x14be   :  { %v2221_v11 = vpop.permute.xlu1 %2220  ;;  %v2126_v12 = vadd.f32 %v2124_v10, %v2116_v8 }
0x14bf   :  { %v2223_v53 = vadd.f32 %v2221_v11, %v2213_v46 }
0x14c0   :  { %3118 = vtanh.f32 %v2126_v12 }
0x14c1   :  { %3120 = vtanh.f32 %v2223_v53 }
0x14cd   :  { %v3119_v13 = vpop.eup %3118 }
0x14ce   :  { %v3121_v15 = vpop.eup %3120  ;;  %2129 = vrot.lane.b32.xlu0 %v3119_v13, %s3146_s30 }
0x14cf   :  { %2226 = vrot.lane.b32.xlu1 %v3121_v15, %s3146_s30 }
0x1540   :  { %v2130_v16 = vpop.permute.xlu0 %2129 }
0x1541   :  { %v2227_v17 = vpop.permute.xlu1 %2226  ;;  %v2132_v3 = vmul.f32 %v3115_v59, %v2130_v16 }
0x1542   :  { %v2229_v57 = vmul.f32 %v3117_v5, %v2227_v17 }
0x1543   :  { %2231 = vrot.lane.b32.xlu0 %v2132_v3, %s3147_s10 }
0x1544   :  { %2306 = vrot.lane.b32.xlu1 %v2229_v57, %s3147_s10 }
0x15b5   :  { %v2232_v4 = vpop.permute.xlu0 %2231 }
0x15b6   :  { %v2307_v7 = vpop.permute.xlu1 %2306  ;;  %2973 = vmatmul.mubr.msk.f32.vlgmr.msra.gmra.mxu0 %vm36_vm0, %v2232_v4 }
0x15b7   :  { %2406 = vst.msk [vmem:[#allocation3] sm:$0xff] %vm36_vm0, %v2307_v7  ;;  %2984 = vmatmul.mubr.msk.f32.vlgmr.msra.gmra.mxu1 %vm36_vm0, %v2307_v7  ;;  %2994 = vmatprep.mubr.msk.f32.mxu0 %vm3145_vm1, %v3144_v2 }
0x15b8   :  { %2987 = vmatpush3.msra.mxu0 %v2428_v37 }
0x15b9   :  { %2988 = vmatprep.subr.mxu0 %v3144_v2 }
0x15ba   :  { %2989 = vmatpush3.msra.mxu0 %v2427_v39 }
0x15bb   :  { %2990 = vmatprep.subr.mxu0 %v3144_v2 }
0x15bc   :  { %2991 = vmatpush3.msra.mxu0 %v2426_v42 }
0x15bd   :  { %2992 = vmatprep.subr.mxu0 %v3144_v2  ;;  %v2563_v2 = vld [vmem:[%s3820_s8] ss:$0 sm:$0xff] }
0x15be   :  { %2993 = vmatpush3.msra.mxu0 %v2425_v30 }
0x1676   :  { %v2301_v9 = vpop.f32.mrf.mxu0 }
0x1677   :  { %v2376_v18 = vpop.f32.mrf.mxu1 }
0x1678   :  { %v2377_v19 = vadd.f32 %v2376_v18, %v2301_v9  ;;  %v2974_v20 = vpop.f32.mrf.mxu0 }
0x1679   :  { %v2985_v21 = vpop.f32.mrf.mxu1 }
0x167a   :  { %v2380_v23 = vadd.f32 %v3143_v22, %v2377_v19 }
0x167c   :  { %3122 = vtanh.f32 %v2380_v23  ;;  %v2562_v25 = vmul.f32 -1.442695, %v2380_v23 }
0x167e   :  { %3124 = vpow2.f32 %v2562_v25 }
0x1689   :  { %v3123_v24 = vpop.eup %3122 }
0x168a   :  { %2390 = vrot.lane.b32.xlu0 %v3123_v24, %s3146_s30 }
0x168b   :  { %v3125_v26 = vpop.eup %3124 }
0x168c   :  { %v2384_v27 = vadd.f32 1.0, %v3125_v26 }
0x168e   :  { %3126 = vrcp.f32 %v2384_v27 }
0x169b   :  { %v3127_v29 = vpop.eup %3126 }
0x169c   :  { %v2388_v31 = vmul.f32 %v3127_v29, %v2126_v12 }
0x16fc   :  { %v2391_v14 = vpop.permute.xlu0 %2390 }
0x16fd   :  { %v2393_v54 = vmul.f32 %v3127_v29, %v2391_v14 }
0x16ff   :  { %2395 = vrot.lane.b32.xlu1 %v2393_v54, %s3147_s10 }
0x1771   :  { %v2396_v32 = vpop.permute.xlu1 %2395 }
0x1772   :  { %v2398_v28 = vadd.f32 %v2396_v32, %v2388_v31 }
0x1774   :  { %3128 = vtanh.f32 %v2398_v28 }
0x1781   :  { %v3129_v43 = vpop.eup %3128 }
0x1782   :  { %2401 = vrot.lane.b32.xlu0 %v3129_v43, %s3146_s30 }
0x1786   :  { %2408 = vrot.lane.b32.xlu0 %v2223_v53, %s3148_s3 }
0x17f4   :  { %v2402_v44 = vpop.permute.xlu0 %2401 }
0x17f5   :  { %v2404_v45 = vmul.f32 %v3127_v29, %v2402_v44 }
0x17f7   :  { %2413 = vrot.lane.b32.xlu1 %v2404_v45, %s3147_s10 }
0x17f8   :  { %v2409_v47 = vpop.permute.xlu0 %2408 }
0x17f9   :  { %2411 = vst.msk [vmem:[#allocation4] sm:$0xff] %vm36_vm0, %v2409_v47 }
0x17fb   :  { %2418 = vrot.lane.b32.xlu1 %v2398_v28, %s3148_s3 }
0x1869   :  { %v2414_v48 = vpop.permute.xlu1 %2413 }
0x186a   :  { %2416 = vst.msk [vmem:[#allocation5] sm:$0xff] %vm36_vm0, %v2414_v48  ;;  %2995 = vmatmul.mubr.msk.f32.vlgmr.msra.gmra.mxu0 %vm36_vm0, %v2414_v48 }
0x186d   :  { %v2419_v49 = vpop.permute.xlu1 %2418 }
0x186e   :  { %2421 = vst.msk [vmem:[#allocation6] sm:$0xff] %vm36_vm0, %v2419_v49 }
0x192a   :  { %v2504_v50 = vpop.f32.mrf.mxu0 }
0x192b   :  { %v2505_v51 = vadd.f32 %v2563_v2, %v2504_v50 }
0x192c   :  { %v2996_v55 = vpop.f32.mrf.mxu0 }
0x192d   :  { %2508 = vst [vmem:[%s3821_s9] sm:$0xff] %v2505_v51 }

</bundles_post_ra>
